<compile_context>
chip_gen: v5e
topology: v5e:2x2
jax: 0.10.0
libtpu: 0.0.40
codegen_flags: <defaults>
</compile_context>

<pallas_src>
import jax
import jax.numpy as jnp
from jax.experimental import pallas as pl
from jax.experimental.pallas import tpu as pltpu


def _round_up(x, m):
    return ((x + m - 1) // m) * m


def highnet_kernel(x_ref,
                   w1_ref, s1_ref, t1_ref,
                   w2_ref, s2_ref, t2_ref,
                   w3_ref, s3_ref, t3_ref,
                   w4_ref, b4_ref,
                   out_ref):
    # Layer 1: fc1 -> bn1 -> relu   (dropout1 is identity at inference)
    h = jnp.dot(x_ref[...], w1_ref[...], preferred_element_type=jnp.float32)
    h = jnp.maximum(h * s1_ref[...] + t1_ref[...], 0.0)
    # Layer 2
    h = jnp.dot(h.astype(jnp.bfloat16), w2_ref[...],
                preferred_element_type=jnp.float32)
    h = jnp.maximum(h * s2_ref[...] + t2_ref[...], 0.0)
    # Layer 3
    h = jnp.dot(h.astype(jnp.bfloat16), w3_ref[...],
                preferred_element_type=jnp.float32)
    h = jnp.maximum(h * s3_ref[...] + t3_ref[...], 0.0)
    # Final classifier: fc4 (output columns are zero-padded to a 128-lane block)
    out_ref[...] = (jnp.dot(h.astype(jnp.bfloat16), w4_ref[...],
                            preferred_element_type=jnp.float32)
                    + b4_ref[...])


def fold_bn(w_t, b, gamma, beta, mean, var, eps=1e-5):
    """Fold Linear bias + BatchNorm1d (running stats) into scale/shift.

    BN(x @ W^T + b) = (x @ W^T) * scale + shift
      scale = gamma / sqrt(var + eps)
      shift = (b - mean) * scale + beta
    w_t is already the (in, out) transposed weight.
    """
    scale = gamma / jnp.sqrt(var + eps)
    shift = (b - mean) * scale + beta
    return w_t, scale.reshape(1, -1), shift.reshape(1, -1)


def highnet_forward(x, params, *, bm=256):
    """Fused HighNet inference forward.

    bm: requested batch tile (rounded to a multiple of 128; 256-multiples are
        preferred on v6e/v7x MXUs).  The batch is zero-padded up to a multiple
        of the effective tile, and on large batches the resulting multi-step
        'parallel' grid lets v7x shard across both TensorCores.
    """
    (w1, s1, t1, w2, s2, t2, w3, s3, t3, w4, b4) = params
    B, D = x.shape
    C = w4.shape[1]

    # Effective batch tile: MXU-row aligned, but don't over-pad tiny batches.
    bm_eff = min(_round_up(bm, 128), _round_up(B, 128))
    Bp = _round_up(B, bm_eff)                 # cdiv-style: no rows dropped
    Cp = _round_up(C, 128)                    # lane-dense classifier width

    # Pad inputs / classifier and cast MXU operands to bf16 (f32 accumulation).
    x_p = jnp.pad(x, ((0, Bp - B), (0, 0))).astype(jnp.bfloat16)
    w4_p = jnp.pad(w4, ((0, 0), (0, Cp - C)))
    b4_p = jnp.pad(b4, ((0, 0), (0, Cp - C)))          # stays f32
    w1b, w2b, w3b, w4b = (w.astype(jnp.bfloat16) for w in (w1, w2, w3, w4_p))

    grid = (Bp // bm_eff,)

    # Grid-invariant operands: whole array resident in VMEM, no per-step
    # double-buffered DMA.
    resident = pl.BlockSpec(memory_space=pltpu.MemorySpace.VMEM)

    flops = 2 * Bp * (D * 512 + 512 * 256 + 256 * 128 + 128 * Cp)
    bytes_accessed = (
        x_p.size * x_p.dtype.itemsize
        + sum(a.size * a.dtype.itemsize
              for a in (w1b, s1, t1, w2b, s2, t2, w3b, s3, t3, w4b, b4_p))
        + Bp * Cp * 4)

    out = pl.pallas_call(
        highnet_kernel,
        out_shape=jax.ShapeDtypeStruct((Bp, Cp), jnp.float32),
        grid=grid,
        in_specs=[
            pl.BlockSpec((bm_eff, D), lambda i: (i, 0)),   # x, tiled over batch
            resident, resident, resident,                  # w1, scale1, shift1
            resident, resident, resident,                  # w2, scale2, shift2
            resident, resident, resident,                  # w3, scale3, shift3
            resident, resident,                            # w4, b4
        ],
        out_specs=pl.BlockSpec((bm_eff, Cp), lambda i: (i, 0)),
        compiler_params=pltpu.CompilerParams(
            dimension_semantics=("parallel",)),
        cost_estimate=pl.CostEstimate(
            flops=flops, transcendentals=0, bytes_accessed=bytes_accessed),
    )(x_p, w1b, s1, t1, w2b, s2, t2, w3b, s3, t3, w4b, b4_p)

    return out[:B, :C]


def init_params(key, input_size, num_classes):
    dims = [(input_size, 512), (512, 256), (256, 128), (128, num_classes)]
    keys = jax.random.split(key, 16)
    ki = iter(range(16))

    def linear(kw, kb, din, dout):
        # PyTorch nn.Linear default init: U(-1/sqrt(din), 1/sqrt(din))
        bound = 1.0 / jnp.sqrt(din)
        w = jax.random.uniform(kw, (din, dout), jnp.float32, -bound, bound)
        b = jax.random.uniform(kb, (dout,), jnp.float32, -bound, bound)
        return w, b

    def bn_stats(km, dout):
        gamma = jnp.ones((dout,), jnp.float32)
        beta = jnp.zeros((dout,), jnp.float32)
        mean = 0.1 * jax.random.normal(km, (dout,), jnp.float32)
        var = jnp.ones((dout,), jnp.float32) * 0.9   # deterministic positive var
        return gamma, beta, mean, var

    params = []
    for li, (din, dout) in enumerate(dims):
        w, b = linear(keys[next(ki)], keys[next(ki)], din, dout)
        if li < 3:
            gamma, beta, mean, var = bn_stats(keys[next(ki)], dout)
            _ = next(ki)  # keep key consumption deterministic
            w, s, t = fold_bn(w, b, gamma, beta, mean, var)
            params += [w, s, t]
        else:
            params += [w, b.reshape(1, -1)]
    return tuple(params)


def reference_forward(x, params, matmul_dtype=jnp.float32):
    (w1, s1, t1, w2, s2, t2, w3, s3, t3, w4, b4) = params

    def mm(a, w):
        return jnp.dot(a.astype(matmul_dtype), w.astype(matmul_dtype),
                       preferred_element_type=jnp.float32)

    h = jnp.maximum(mm(x, w1) * s1 + t1, 0.0)
    h = jnp.maximum(mm(h, w2) * s2 + t2, 0.0)
    h = jnp.maximum(mm(h, w3) * s3 + t3, 0.0)
    return mm(h, w4) + b4


if __name__ == "__main__":
    # TODO(synk): train-mode dropout / batch-statistics BatchNorm are not
    # implemented; this kernel is the inference forward pass only.
    input_size = 64
    num_classes = 10
    batch = 8

    key = jax.random.PRNGKey(0)
    kx, kp = jax.random.split(key)
    x = jax.random.normal(kx, (batch, input_size), jnp.float32)
    params = init_params(kp, input_size, num_classes)

    out = jax.block_until_ready(highnet_forward(x, params))
    assert out.shape == (batch, num_classes)

    # Tight check against a reference using the same bf16 matmul operands.
    ref_bf16 = reference_forward(x, params, matmul_dtype=jnp.bfloat16)
    assert jnp.allclose(out, ref_bf16, atol=2e-3, rtol=2e-3), \
        float(jnp.max(jnp.abs(out - ref_bf16)))

    # Looser check against full-f32 HighNet semantics (bf16 operand rounding).
    ref_f32 = reference_forward(x, params, matmul_dtype=jnp.float32)
    assert jnp.allclose(out, ref_f32, atol=5e-2, rtol=5e-2), \
        float(jnp.max(jnp.abs(out - ref_f32)))

    print("KERNEL_OK")
</pallas_src>

<mosaic_0001>
module attributes {stable_mosaic.version = 11 : i64} {
  func.func @highnet_kernel(%arg0: i32, %arg1: memref<128x64xbf16, #tpu.memory_space<vmem>>, %arg2: memref<64x512xbf16, #tpu.memory_space<vmem>>, %arg3: memref<1x512xf32, #tpu.memory_space<vmem>>, %arg4: memref<1x512xf32, #tpu.memory_space<vmem>>, %arg5: memref<512x256xbf16, #tpu.memory_space<vmem>>, %arg6: memref<1x256xf32, #tpu.memory_space<vmem>>, %arg7: memref<1x256xf32, #tpu.memory_space<vmem>>, %arg8: memref<256x128xbf16, #tpu.memory_space<vmem>>, %arg9: memref<1x128xf32, #tpu.memory_space<vmem>>, %arg10: memref<1x128xf32, #tpu.memory_space<vmem>>, %arg11: memref<128x128xbf16, #tpu.memory_space<vmem>>, %arg12: memref<1x128xf32, #tpu.memory_space<vmem>>, %arg13: memref<128x128xf32, #tpu.memory_space<vmem>>) attributes {dimension_semantics = [#tpu.dimension_semantics<parallel>], iteration_bounds = array<i64: 1>, scalar_prefetch = 0 : i64, scratch_operands = 0 : i64, tpu.core_type = #tpu.core_type<tc>, window_params = [{transform_indices = @transform_0, window_bounds = array<i64: 128, 64>}, {pipeline_mode = #tpu.pipeline_mode<synchronous>, transform_indices = @transform_1, window_bounds = array<i64: 64, 512>}, {pipeline_mode = #tpu.pipeline_mode<synchronous>, transform_indices = @transform_2, window_bounds = array<i64: 1, 512>}, {pipeline_mode = #tpu.pipeline_mode<synchronous>, transform_indices = @transform_3, window_bounds = array<i64: 1, 512>}, {pipeline_mode = #tpu.pipeline_mode<synchronous>, transform_indices = @transform_4, window_bounds = array<i64: 512, 256>}, {pipeline_mode = #tpu.pipeline_mode<synchronous>, transform_indices = @transform_5, window_bounds = array<i64: 1, 256>}, {pipeline_mode = #tpu.pipeline_mode<synchronous>, transform_indices = @transform_6, window_bounds = array<i64: 1, 256>}, {pipeline_mode = #tpu.pipeline_mode<synchronous>, transform_indices = @transform_7, window_bounds = array<i64: 256, 128>}, {pipeline_mode = #tpu.pipeline_mode<synchronous>, transform_indices = @transform_8, window_bounds = array<i64: 1, 128>}, {pipeline_mode = #tpu.pipeline_mode<synchronous>, transform_indices = @transform_9, window_bounds = array<i64: 1, 128>}, {pipeline_mode = #tpu.pipeline_mode<synchronous>, transform_indices = @transform_10, window_bounds = array<i64: 128, 128>}, {pipeline_mode = #tpu.pipeline_mode<synchronous>, transform_indices = @transform_11, window_bounds = array<i64: 1, 128>}, {transform_indices = @transform_12, window_bounds = array<i64: 128, 128>}]} {
    %c0 = arith.constant 0 : index
    %c0_0 = arith.constant 0 : index
    %0 = vector.load %arg1[%c0, %c0_0] : memref<128x64xbf16, #tpu.memory_space<vmem>>, vector<128x64xbf16>
    %c0_1 = arith.constant 0 : index
    %c0_2 = arith.constant 0 : index
    %1 = vector.load %arg2[%c0_1, %c0_2] : memref<64x512xbf16, #tpu.memory_space<vmem>>, vector<64x512xbf16>
    %cst = arith.constant dense<0.000000e+00> : vector<128x512xf32>
    %2 = tpu.matmul %0, %1, %cst {dimension_numbers = #tpu.dot_dimension_numbers<[1], [0], [0], [1], [0, 0, 1, 1], [], []>} : vector<128x64xbf16>, vector<64x512xbf16>, vector<128x512xf32> -> vector<128x512xf32>
    %c0_3 = arith.constant 0 : index
    %c0_4 = arith.constant 0 : index
    %3 = vector.load %arg3[%c0_3, %c0_4] : memref<1x512xf32, #tpu.memory_space<vmem>>, vector<1x512xf32>
    %4 = vector.broadcast %3 : vector<1x512xf32> to vector<128x512xf32>
    %5 = arith.mulf %2, %4 : vector<128x512xf32>
    %c0_5 = arith.constant 0 : index
    %c0_6 = arith.constant 0 : index
    %6 = vector.load %arg4[%c0_5, %c0_6] : memref<1x512xf32, #tpu.memory_space<vmem>>, vector<1x512xf32>
    %7 = vector.broadcast %6 : vector<1x512xf32> to vector<128x512xf32>
    %8 = arith.addf %5, %7 : vector<128x512xf32>
    %cst_7 = arith.constant 0.000000e+00 : f32
    %9 = vector.broadcast %cst_7 : f32 to vector<128x512xf32>
    %10 = arith.maximumf %8, %9 : vector<128x512xf32>
    %11 = arith.truncf %10 : vector<128x512xf32> to vector<128x512xbf16>
    %c0_8 = arith.constant 0 : index
    %c0_9 = arith.constant 0 : index
    %12 = vector.load %arg5[%c0_8, %c0_9] : memref<512x256xbf16, #tpu.memory_space<vmem>>, vector<512x256xbf16>
    %cst_10 = arith.constant dense<0.000000e+00> : vector<128x256xf32>
    %13 = tpu.matmul %11, %12, %cst_10 {dimension_numbers = #tpu.dot_dimension_numbers<[1], [0], [0], [1], [0, 0, 1, 1], [], []>} : vector<128x512xbf16>, vector<512x256xbf16>, vector<128x256xf32> -> vector<128x256xf32>
    %c0_11 = arith.constant 0 : index
    %c0_12 = arith.constant 0 : index
    %14 = vector.load %arg6[%c0_11, %c0_12] : memref<1x256xf32, #tpu.memory_space<vmem>>, vector<1x256xf32>
    %15 = vector.broadcast %14 : vector<1x256xf32> to vector<128x256xf32>
    %16 = arith.mulf %13, %15 : vector<128x256xf32>
    %c0_13 = arith.constant 0 : index
    %c0_14 = arith.constant 0 : index
    %17 = vector.load %arg7[%c0_13, %c0_14] : memref<1x256xf32, #tpu.memory_space<vmem>>, vector<1x256xf32>
    %18 = vector.broadcast %17 : vector<1x256xf32> to vector<128x256xf32>
    %19 = arith.addf %16, %18 : vector<128x256xf32>
    %cst_15 = arith.constant 0.000000e+00 : f32
    %20 = vector.broadcast %cst_15 : f32 to vector<128x256xf32>
    %21 = arith.maximumf %19, %20 : vector<128x256xf32>
    %22 = arith.truncf %21 : vector<128x256xf32> to vector<128x256xbf16>
    %c0_16 = arith.constant 0 : index
    %c0_17 = arith.constant 0 : index
    %23 = vector.load %arg8[%c0_16, %c0_17] : memref<256x128xbf16, #tpu.memory_space<vmem>>, vector<256x128xbf16>
    %cst_18 = arith.constant dense<0.000000e+00> : vector<128x128xf32>
    %24 = tpu.matmul %22, %23, %cst_18 {dimension_numbers = #tpu.dot_dimension_numbers<[1], [0], [0], [1], [0, 0, 1, 1], [], []>} : vector<128x256xbf16>, vector<256x128xbf16>, vector<128x128xf32> -> vector<128x128xf32>
    %c0_19 = arith.constant 0 : index
    %c0_20 = arith.constant 0 : index
    %25 = vector.load %arg9[%c0_19, %c0_20] : memref<1x128xf32, #tpu.memory_space<vmem>>, vector<1x128xf32>
    %26 = vector.broadcast %25 : vector<1x128xf32> to vector<128x128xf32>
    %27 = arith.mulf %24, %26 : vector<128x128xf32>
    %c0_21 = arith.constant 0 : index
    %c0_22 = arith.constant 0 : index
    %28 = vector.load %arg10[%c0_21, %c0_22] : memref<1x128xf32, #tpu.memory_space<vmem>>, vector<1x128xf32>
    %29 = vector.broadcast %28 : vector<1x128xf32> to vector<128x128xf32>
    %30 = arith.addf %27, %29 : vector<128x128xf32>
    %cst_23 = arith.constant 0.000000e+00 : f32
    %31 = vector.broadcast %cst_23 : f32 to vector<128x128xf32>
    %32 = arith.maximumf %30, %31 : vector<128x128xf32>
    %33 = arith.truncf %32 : vector<128x128xf32> to vector<128x128xbf16>
    %c0_24 = arith.constant 0 : index
    %c0_25 = arith.constant 0 : index
    %34 = vector.load %arg11[%c0_24, %c0_25] : memref<128x128xbf16, #tpu.memory_space<vmem>>, vector<128x128xbf16>
    %cst_26 = arith.constant dense<0.000000e+00> : vector<128x128xf32>
    %35 = tpu.matmul %33, %34, %cst_26 {dimension_numbers = #tpu.dot_dimension_numbers<[1], [0], [0], [1], [0, 0, 1, 1], [], []>} : vector<128x128xbf16>, vector<128x128xbf16>, vector<128x128xf32> -> vector<128x128xf32>
    %c0_27 = arith.constant 0 : index
    %c0_28 = arith.constant 0 : index
    %36 = vector.load %arg12[%c0_27, %c0_28] : memref<1x128xf32, #tpu.memory_space<vmem>>, vector<1x128xf32>
    %37 = vector.broadcast %36 : vector<1x128xf32> to vector<128x128xf32>
    %38 = arith.addf %35, %37 : vector<128x128xf32>
    %c0_29 = arith.constant 0 : index
    %c0_30 = arith.constant 0 : index
    %39 = vector.load %arg13[%c0_29, %c0_30] : memref<128x128xf32, #tpu.memory_space<vmem>>, vector<128x128xf32>
    tpu.vector_store %arg13[%c0_29, %c0_30], %38 {strides = array<i32>} : memref<128x128xf32, #tpu.memory_space<vmem>>, vector<128x128xf32>,
    return
  }
  func.func @transform_0(%arg0: i32) -> (i32, i32) {
    %c0_i32 = arith.constant 0 : i32
    %c0_i32_0 = arith.constant 0 : i32
    return %arg0, %c0_i32 : i32, i32
  }
  func.func @transform_1(%arg0: i32) -> (i32, i32) {
    %c0_i32 = arith.constant 0 : i32
    %c0_i32_0 = arith.constant 0 : i32
    %c0_i32_1 = arith.constant 0 : i32
    return %c0_i32, %c0_i32_0 : i32, i32
  }
  func.func @transform_2(%arg0: i32) -> (i32, i32) {
    %c0_i32 = arith.constant 0 : i32
    %c0_i32_0 = arith.constant 0 : i32
    %c0_i32_1 = arith.constant 0 : i32
    return %c0_i32, %c0_i32_0 : i32, i32
  }
  func.func @transform_3(%arg0: i32) -> (i32, i32) {
    %c0_i32 = arith.constant 0 : i32
    %c0_i32_0 = arith.constant 0 : i32
    %c0_i32_1 = arith.constant 0 : i32
    return %c0_i32, %c0_i32_0 : i32, i32
  }
  func.func @transform_4(%arg0: i32) -> (i32, i32) {
    %c0_i32 = arith.constant 0 : i32
    %c0_i32_0 = arith.constant 0 : i32
    %c0_i32_1 = arith.constant 0 : i32
    return %c0_i32, %c0_i32_0 : i32, i32
  }
  func.func @transform_5(%arg0: i32) -> (i32, i32) {
    %c0_i32 = arith.constant 0 : i32
    %c0_i32_0 = arith.constant 0 : i32
    %c0_i32_1 = arith.constant 0 : i32
    return %c0_i32, %c0_i32_0 : i32, i32
  }
  func.func @transform_6(%arg0: i32) -> (i32, i32) {
    %c0_i32 = arith.constant 0 : i32
    %c0_i32_0 = arith.constant 0 : i32
    %c0_i32_1 = arith.constant 0 : i32
    return %c0_i32, %c0_i32_0 : i32, i32
  }
  func.func @transform_7(%arg0: i32) -> (i32, i32) {
    %c0_i32 = arith.constant 0 : i32
    %c0_i32_0 = arith.constant 0 : i32
    %c0_i32_1 = arith.constant 0 : i32
    return %c0_i32, %c0_i32_0 : i32, i32
  }
  func.func @transform_8(%arg0: i32) -> (i32, i32) {
    %c0_i32 = arith.constant 0 : i32
    %c0_i32_0 = arith.constant 0 : i32
    %c0_i32_1 = arith.constant 0 : i32
    return %c0_i32, %c0_i32_0 : i32, i32
  }
  func.func @transform_9(%arg0: i32) -> (i32, i32) {
    %c0_i32 = arith.constant 0 : i32
    %c0_i32_0 = arith.constant 0 : i32
    %c0_i32_1 = arith.constant 0 : i32
    return %c0_i32, %c0_i32_0 : i32, i32
  }
  func.func @transform_10(%arg0: i32) -> (i32, i32) {
    %c0_i32 = arith.constant 0 : i32
    %c0_i32_0 = arith.constant 0 : i32
    %c0_i32_1 = arith.constant 0 : i32
    return %c0_i32, %c0_i32_0 : i32, i32
  }
  func.func @transform_11(%arg0: i32) -> (i32, i32) {
    %c0_i32 = arith.constant 0 : i32
    %c0_i32_0 = arith.constant 0 : i32
    %c0_i32_1 = arith.constant 0 : i32
    return %c0_i32, %c0_i32_0 : i32, i32
  }
  func.func @transform_12(%arg0: i32) -> (i32, i32) {
    %c0_i32 = arith.constant 0 : i32
    %c0_i32_0 = arith.constant 0 : i32
    return %arg0, %c0_i32 : i32, i32
  }
}

</mosaic_0001>

<bundles_post_ra>
// kernel: tpu_custom_call.1
= control target key start
LH: loop header
LB: loop body
LE: loop exit
PB: predicated region body
PF: predicated region fallthrough
CT: control target
= control target key end

     0   :  { %17 = vsyncpa [#allocation3], 0  ;;  %s3588_s0 = inlined_call_operand.vmem [shape: bf16[128,64], index: 0, kind: input, shape index: {}]   ;;  %s3589_s1 = inlined_call_operand.hbm [shape: bf16[64,512], index: 1, kind: input, shape index: {}]   ;;  %s3590_s2 = inlined_call_operand.vmem [shape: f32[1,512], index: 2, kind: input, shape index: {}]   ;;  %s3591_s3 = inlined_call_operand.vmem [shape: f32[1,512], index: 3, kind: input, shape index: {}]   ;;  %s3592_s4 = inlined_call_operand.hbm [shape: bf16[512,256], index: 4, kind: input, shape index: {}]   ;;  %s3593_s5 = inlined_call_operand.vmem [shape: f32[1,256], index: 5, kind: input, shape index: {}]   ;;  %s3594_s6 = inlined_call_operand.vmem [shape: f32[1,256], index: 6, kind: input, shape index: {}]   ;;  %s3595_s7 = inlined_call_operand.hbm [shape: bf16[256,128], index: 7, kind: input, shape index: {}]   ;;  %s3596_s8 = inlined_call_operand.vmem [shape: f32[1,128], index: 8, kind: input, shape index: {}]   ;;  %s3597_s9 = inlined_call_operand.vmem [shape: f32[1,128], index: 9, kind: input, shape index: {}]   ;;  %s3598_s10 = inlined_call_operand.vmem [shape: bf16[128,128], index: 10, kind: input, shape index: {}]   ;;  %s3599_s11 = inlined_call_operand.vmem [shape: f32[1,128], index: 11, kind: input, shape index: {}]   ;;  %s3600_s12 = inlined_call_operand.hbm [shape: f32[128,128], index: 12, kind: output, shape index: {}]  }
   0x1   :  { %18 = vsyncpa [#allocation6], 0  ;;  %s43_s23 = sshll.u32 %s3592_s4, 4  ;;  %s44_s23 = int_to_ptr.hbm [resolvable:$true] %s43_s23 }
   0x2   :  { %19 = vsyncpa [#allocation4], 0  ;;  %s2769_s24 = smov [#allocation5]   ;;  %s26_s28 = sshll.u32 %s3589_s1, 4  ;;  %s27_s28 = int_to_ptr.hbm [resolvable:$true] %s26_s28 }
   0x3   :  { %s45_s25 = sshll.u32 %s2769_s24, 4  ;;  %s2770_s29 = smov 128   ;;  %s46_s25 = int_to_ptr.vmem [resolvable:$true] %s45_s25 }
   0x4   :  { %s2771_s30 = smov 8   ;;  %s2772_s13 = smov [#allocation2]  }
   0x5   :  { %51 = dma.hbm_to_vmem [thread:$0]  %s44_s23, 8192, %s46_s25, [#allocation6], %s2770_s29, %s2770_s29, %s2771_s30  }
   0x6   :  { %s28_s14 = sshll.u32 %s2772_s13, 4  ;;  %s2773_s4 = smov 256   ;;  %s29_s14 = int_to_ptr.vmem [resolvable:$true] %s28_s14 }
   0x7   :  { %s2774_s15 = smov 16   ;;  %s60_s18 = sshll.u32 %s3595_s7, 4  ;;  %s61_s18 = int_to_ptr.hbm [resolvable:$true] %s60_s18 }
   0x8   :  { %34 = dma.hbm_to_vmem [thread:$0]  %s27_s28, 2048, %s29_s14, [#allocation3], %s2773_s4, %s2773_s4, %s2774_s15  }
   0x9   :  { %s2775_s19 = smov [#allocation7]   ;;  %s2776_s20 = smov 64  }
   0xa   :  { %s62_s1 = sshll.u32 %s2775_s19, 4  ;;  %s2777_s21 = smov 4   ;;  %s63_s1 = int_to_ptr.vmem [resolvable:$true] %s62_s1 }
   0xb   :  { %68 = dma.hbm_to_vmem [thread:$0]  %s61_s18, 2048, %s63_s1, [#allocation6], %s2776_s20, %s2776_s20, %s2777_s21  }
   0xc   :  { %2763 = dma.done.wait [#allocation3], 2048  }
   0xd   :  { %2764 = vsyncadd [#allocation3], 4294965248 }
   0xe   :  { %2765 = dma.done.wait [#allocation6], 10240  }
   0xf   :  { %2766 = vsyncadd [#allocation6], 4294957056  ;;  %v2132_v0 = vld [vmem:[#allocation2 + $0x60] sm:$0xf]  ;;  %v2552_v1 = vld [vmem:[#allocation2 + $0x6c] sm:$0xf0] }
  0x10   :  { %v2116_v2 = vld [vmem:[#allocation2 + $0x40] sm:$0xf]  ;;  %v2133_v3 = vor.u32 %v2552_v1, %v2132_v0  ;;  %v2548_v4 = vld [vmem:[#allocation2 + $0x4c] sm:$0xf0]  ;;  %v2550_v8 = vld [vmem:[#allocation2 + $0x64] sm:$0xf] }
  0x11   :  { %v2117_v5 = vor.u32 %v2548_v4, %v2116_v2  ;;  %v2100_v6 = vld [vmem:[#allocation2 + $0x20] sm:$0xf]  ;;  %v2544_v7 = vld [vmem:[#allocation2 + $0x2c] sm:$0xf0]  ;;  %v2134_v9 = vld [vmem:[#allocation2 + $0x70] sm:$0xf0] }
  0x12   :  { %271 = vmatpush.bf16.msra.mxu0 %v2133_v3  ;;  %2642 = vmatpush.bf16.msra.mxu3 %v2133_v3  ;;  %v2137_v10 = vor.u32 %v2550_v8, %v2134_v9  ;;  %v2101_v11 = vor.u32 %v2544_v7, %v2100_v6  ;;  %v2084_v12 = vld [vmem:[#allocation2] sm:$0xf]  ;;  %v2546_v13 = vld [vmem:[#allocation2 + $0x44] sm:$0xf]  ;;  %v2118_v14 = vld [vmem:[#allocation2 + $0x50] sm:$0xf0] }
  0x13   :  { %v2540_v15 = vld [vmem:[#allocation2 + $0xc] sm:$0xf0]  ;;  %v2551_v16 = vld [vmem:[#allocation2 + $0x6c] sm:$0xf]  ;;  %v2142_v17 = vld [vmem:[#allocation2 + $0x78] sm:$0xf0]  ;;  %v2121_v18 = vor.u32 %v2546_v13, %v2118_v14 }
  0x14   :  { %2646 = vmatpush.bf16.msra.mxu1 %v2137_v10  ;;  %v2085_v19 = vor.u32 %v2540_v15, %v2084_v12  ;;  %v2145_v20 = vor.u32 %v2551_v16, %v2142_v17  ;;  %v2542_v21 = vld [vmem:[#allocation2 + $0x24] sm:$0xf]  ;;  %v2102_v22 = vld [vmem:[#allocation2 + $0x30] sm:$0xf0]  ;;  %v2547_v23 = vld [vmem:[#allocation2 + $0x4c] sm:$0xf] }
  0x15   :  { %v2126_v24 = vld [vmem:[#allocation2 + $0x58] sm:$0xf0]  ;;  %v2859_v25 = vld [vmem:[%s3588_s0] sm:$0xff]  ;;  %v2864_v26 = vld [vmem:[%s3588_s0 + $0x10] sm:$0xff]  ;;  %vm242_vm0 = vcmask 523264   ;;  %v2105_v27 = vor.u32 %v2542_v21, %v2102_v22  ;;  %s2036_s7 = sshll.u32 %s3600_s12, 4  ;;  %s2037_s7 = int_to_ptr.hbm [resolvable:$true] %s2036_s7 }
  0x16   :  { %272 = vmatpush.bf16.msra.mxu0 %v2117_v5  ;;  %2643 = vmatpush.bf16.msra.mxu3 %v2117_v5  ;;  %v2129_v28 = vor.u32 %v2547_v23, %v2126_v24  ;;  %v2538_v29 = vld [vmem:[#allocation2 + $0x4] sm:$0xf]  ;;  %v2086_v30 = vld [vmem:[#allocation2 + $0x10] sm:$0xf0]  ;;  %v2875_v32 = vld [vmem:[%s3588_s0 + $0x8] sm:$0xff] }
  0x17   :  { %v2089_v31 = vor.u32 %v2538_v29, %v2086_v30  ;;  %v2880_v33 = vld [vmem:[%s3588_s0 + $0x18] sm:$0xff]  ;;  %v2140_v34 = vld [vmem:[#allocation2 + $0x68] sm:$0xf]  ;;  %v2543_v37 = vld [vmem:[#allocation2 + $0x2c] sm:$0xf] }
  0x18   :  { %2647 = vmatpush.bf16.msra.mxu1 %v2121_v18  ;;  %v2553_v35 = vld [vmem:[#allocation2 + $0x74] sm:$0xf0]  ;;  %v2110_v38 = vld [vmem:[#allocation2 + $0x38] sm:$0xf0]  ;;  %v2124_v39 = vld [vmem:[#allocation2 + $0x48] sm:$0xf] }
  0x19   :  { %v2141_v36 = vor.u32 %v2553_v35, %v2140_v34  ;;  %v2113_v40 = vor.u32 %v2543_v37, %v2110_v38  ;;  %v2549_v41 = vld [vmem:[#allocation2 + $0x54] sm:$0xf0]  ;;  %v2108_v43 = vld [vmem:[#allocation2 + $0x28] sm:$0xf]  ;;  %v2891_v49 = vld [vmem:[%s3588_s0 + $0x20] sm:$0xff] }
  0x1a   :  { %273 = vmatpush.bf16.msra.mxu0 %v2101_v11  ;;  %2644 = vmatpush.bf16.msra.mxu3 %v2101_v11  ;;  %v2125_v42 = vor.u32 %v2549_v41, %v2124_v39  ;;  %v2545_v44 = vld [vmem:[#allocation2 + $0x34] sm:$0xf0]  ;;  %v2092_v46 = vld [vmem:[#allocation2 + $0x8] sm:$0xf]  ;;  %v2539_v50 = vld [vmem:[#allocation2 + $0xc] sm:$0xf] }
  0x1b   :  { %2650 = vmatpush.bf16.msra.mxu2 %v2141_v36  ;;  %v2109_v45 = vor.u32 %v2545_v44, %v2108_v43  ;;  %v2541_v47 = vld [vmem:[#allocation2 + $0x14] sm:$0xf0]  ;;  %v2094_v51 = vld [vmem:[#allocation2 + $0x18] sm:$0xf0]  ;;  %v2904_v53 = vld [vmem:[%s3588_s0 + $0x28] sm:$0xff] }
  0x1c   :  { %2648 = vmatpush.bf16.msra.mxu1 %v2105_v27  ;;  %v2093_v48 = vor.u32 %v2541_v47, %v2092_v46  ;;  %v2097_v52 = vor.u32 %v2539_v50, %v2094_v51  ;;  %v2917_v54 = vld [vmem:[%s3588_s0 + $0x30] sm:$0xff]  ;;  %v2569_v56 = vld [vmem:[#allocation5 + $0x74] sm:$0xf0]  ;;  %v2228_v59 = vld [vmem:[#allocation5 + $0x60] sm:$0xf] }
  0x1d   :  { %v2236_v55 = vld [vmem:[#allocation5 + $0x70] sm:$0xf]  ;;  %v2930_v58 = vld [vmem:[%s3588_s0 + $0x38] sm:$0xff]  ;;  %v2567_v60 = vld [vmem:[#allocation5 + $0x64] sm:$0xf0] }
  0x1e   :  { %274 = vmatpush.bf16.msra.mxu0 %v2085_v19  ;;  %2645 = vmatpush.bf16.msra.mxu3 %v2085_v19  ;;  %v2237_v57 = vor.u32 %v2569_v56, %v2236_v55  ;;  %v2428_v61 = vld [vmem:[#allocation5 + $0x1f0] sm:$0xf]  ;;  %v2229_v62 = vor.u32 %v2567_v60, %v2228_v59  ;;  %v2617_v63 = vld [vmem:[#allocation5 + $0x1f4] sm:$0xf0]  ;;  %v2212_v4 = vld [vmem:[#allocation5 + $0x40] sm:$0xf] }
  0x1f   :  { %2651 = vmatpush.bf16.msra.mxu2 %v2125_v42  ;;  %v2220_v0 = vld [vmem:[#allocation5 + $0x50] sm:$0xf]  ;;  %v2565_v1 = vld [vmem:[#allocation5 + $0x54] sm:$0xf0]  ;;  %v2429_v2 = vor.u32 %v2617_v63, %v2428_v61  ;;  %v2563_v5 = vld [vmem:[#allocation5 + $0x44] sm:$0xf0] }
  0x20   :  { %2649 = vmatpush.bf16.msra.mxu1 %v2089_v31  ;;  %v2221_v3 = vor.u32 %v2565_v1, %v2220_v0  ;;  %v2213_v6 = vor.u32 %v2563_v5, %v2212_v4  ;;  %v2204_v7 = vld [vmem:[#allocation5 + $0x30] sm:$0xf]  ;;  %v2561_v8 = vld [vmem:[#allocation5 + $0x34] sm:$0xf0]  ;;  %v2559_v11 = vld [vmem:[#allocation5 + $0x24] sm:$0xf0] }
  0x21   :  { %2146 = vmatmul.msk.bf16.vlgmr.msra.gmra.mxu0 %vm242_vm0, %v2859_v25  ;;  %2148 = vmatmul.msk.bf16.vlgmr.msra.gmra.mxu3 %vm242_vm0, %v2864_v26  ;;  %v2205_v9 = vor.u32 %v2561_v8, %v2204_v7  ;;  %v2188_v13 = vld [vmem:[#allocation5 + $0x10] sm:$0xf]  ;;  %v2557_v14 = vld [vmem:[#allocation5 + $0x14] sm:$0xf0]  ;;  %v2420_v16 = vld [vmem:[#allocation5 + $0x1e0] sm:$0xf] }
  0x22   :  { %418 = vmatpush.bf16.msrb.mxu3 %v2145_v20  ;;  %320 = vmatpush.bf16.msrb.mxu0 %v2137_v10  ;;  %v2196_v10 = vld [vmem:[#allocation5 + $0x20] sm:$0xf]  ;;  %v2189_v15 = vor.u32 %v2557_v14, %v2188_v13  ;;  %v2615_v17 = vld [vmem:[#allocation5 + $0x1e4] sm:$0xf0]  ;;  %v2300_v22 = vld [vmem:[#allocation5 + $0xf0] sm:$0xf] }
  0x23   :  { %2156 = vmatmul.msk.bf16.vlgmr.msra.gmra.mxu1 %vm242_vm0, %v2864_v26  ;;  %2652 = vmatpush.bf16.msra.mxu2 %v2109_v45  ;;  %v2197_v12 = vor.u32 %v2559_v11, %v2196_v10  ;;  %v2421_v19 = vor.u32 %v2615_v17, %v2420_v16  ;;  %v2555_v20 = vld [vmem:[#allocation5 + $0x4] sm:$0xf0]  ;;  %v2585_v23 = vld [vmem:[#allocation5 + $0xf4] sm:$0xf0]  ;;  %v2364_v29 = vld [vmem:[#allocation5 + $0x170] sm:$0xf] }
  0x24   :  { %v2301_v24 = vor.u32 %v2585_v23, %v2300_v22  ;;  %v2601_v30 = vld [vmem:[#allocation5 + $0x174] sm:$0xf0]  ;;  %v2284_v34 = vld [vmem:[#allocation5 + $0xd0] sm:$0xf]  ;;  %v2276_v39 = vld [vmem:[#allocation5 + $0xc0] sm:$0xf] }
  0x25   :  { %v2581_v35 = vld [vmem:[#allocation5 + $0xd4] sm:$0xf0]  ;;  %v2412_v37 = vld [vmem:[#allocation5 + $0x1d0] sm:$0xf]  ;;  %v2260_v51 = vld [vmem:[#allocation5 + $0xa0] sm:$0xf] }
  0x26   :  { %321 = vmatpush.bf16.msrb.mxu0 %v2121_v18  ;;  %419 = vmatpush.bf16.msrb.mxu3 %v2129_v28  ;;  %v2180_v18 = vld [vmem:[#allocation5] sm:$0xf]  ;;  %v2613_v38 = vld [vmem:[#allocation5 + $0x1d4] sm:$0xf0]  ;;  %v2268_v43 = vld [vmem:[#allocation5 + $0xb0] sm:$0xf] }
  0x27   :  { %2653 = vmatpush.bf16.msra.mxu2 %v2093_v48  ;;  %v2181_v21 = vor.u32 %v2555_v20, %v2180_v18  ;;  %1140 = vmatpush.bf16.msrb.mxu1 %v2301_v24  ;;  %v2577_v44 = vld [vmem:[#allocation5 + $0xb4] sm:$0xf0]  ;;  %v2599_v59 = vld [vmem:[#allocation5 + $0x164] sm:$0xf0]  ;;  %v2252_v63 = vld [vmem:[#allocation5 + $0x90] sm:$0xf] }
  0x28   :  { %v2269_v46 = vor.u32 %v2577_v44, %v2268_v43  ;;  %v2573_v0 = vld [vmem:[#allocation5 + $0x94] sm:$0xf0]  ;;  %v2404_v5 = vld [vmem:[#allocation5 + $0x1c0] sm:$0xf]  ;;  %v2348_v11 = vld [vmem:[#allocation5 + $0x150] sm:$0xf] }
  0x29   :  { %v2244_v8 = vld [vmem:[#allocation5 + $0x80] sm:$0xf] }
  0x2a   :  { %322 = vmatpush.bf16.msrb.mxu0 %v2105_v27  ;;  %420 = vmatpush.bf16.msrb.mxu3 %v2113_v40  ;;  %v2583_v27 = vld [vmem:[#allocation5 + $0xe4] sm:$0xf0]  ;;  %v2413_v40 = vor.u32 %v2613_v38, %v2412_v37  ;;  %v2332_v37 = vld [vmem:[#allocation5 + $0x130] sm:$0xf]  ;;  %v2593_v38 = vld [vmem:[#allocation5 + $0x134] sm:$0xf0] }
  0x2b   :  { %2164 = vmatmul.msk.bf16.vlgmr.msra.gmra.mxu2 %vm242_vm0, %v2864_v26 }
  0x2e   :  { %323 = vmatpush.bf16.msrb.mxu0 %v2089_v31  ;;  %421 = vmatpush.bf16.msrb.mxu3 %v2097_v52  ;;  %v2365_v31 = vor.u32 %v2601_v30, %v2364_v29  ;;  %v2575_v52 = vld [vmem:[#allocation5 + $0xa4] sm:$0xf0]  ;;  %v2340_v29 = vld [vmem:[#allocation5 + $0x140] sm:$0xf] }
  0x2f   :  { %v2261_v55 = vor.u32 %v2575_v52, %v2260_v51  ;;  %v2595_v30 = vld [vmem:[#allocation5 + $0x144] sm:$0xf0] }
  0x30   :  { %1189 = vmatpush.bf16.msrb.mxu2 %v2365_v31 }
  0x31   :  { %2147 = vmatmul.msk.bf16.gmra.mxu0 %vm242_vm0, %v2875_v32  ;;  %2149 = vmatmul.msk.bf16.gmra.mxu3 %vm242_vm0, %v2880_v33 }
  0x32   :  { %369 = vmatpush.bf16.msra.mxu0 %v2141_v36  ;;  %1238 = vmatpush.bf16.msra.mxu3 %v2429_v2  ;;  %v2285_v36 = vor.u32 %v2581_v35, %v2284_v34  ;;  %v2341_v34 = vor.u32 %v2595_v30, %v2340_v29 }
  0x33   :  { %2157 = vmatmul.msk.bf16.gmra.mxu1 %vm242_vm0, %v2880_v33 }
  0x36   :  { %370 = vmatpush.bf16.msra.mxu0 %v2125_v42  ;;  %1239 = vmatpush.bf16.msra.mxu3 %v2421_v19  ;;  %v2951_v42 = vld [vmem:[%s3590_s2] sm:$0xf] }
  0x37   :  { %v2954_v47 = vperm.slane %v2951_v42, 0 }
  0x3a   :  { %371 = vmatpush.bf16.msra.mxu0 %v2109_v45  ;;  %1240 = vmatpush.bf16.msra.mxu3 %v2413_v40 }
  0x3b   :  { %2165 = vmatmul.msk.bf16.gmra.mxu2 %vm242_vm0, %v2880_v33 }
  0x3e   :  { %372 = vmatpush.bf16.msra.mxu0 %v2093_v48  ;;  %v2959_v48 = vld [vmem:[%s3591_s3] sm:$0xf] }
  0x3f   :  { %v2965_v56 = vperm.slane %v2959_v48, 0  ;;  %v2994_v44 = vperm.slane %v2959_v48, 1 }
  0x41   :  { %2150 = vmatmul.msk.bf16.gmra.mxu3 %vm242_vm0, %v2891_v49  ;;  %2154 = vmatmul.msk.bf16.vlgmr.msrb.gmra.mxu0 %vm242_vm0, %v2859_v25 }
  0x42   :  { %1091 = vmatpush.bf16.msrb.mxu0 %v2237_v57  ;;  %v2356_v57 = vld [vmem:[#allocation5 + $0x160] sm:$0xf] }
  0x43   :  { %2158 = vmatmul.msk.bf16.gmra.mxu1 %vm242_vm0, %v2891_v49  ;;  %v2357_v61 = vor.u32 %v2599_v59, %v2356_v57  ;;  %v2316_v59 = vld [vmem:[#allocation5 + $0x110] sm:$0xf] }
  0x45   :  { %1190 = vmatpush.bf16.msrb.mxu2 %v2357_v61  ;;  %v2589_v61 = vld [vmem:[#allocation5 + $0x114] sm:$0xf0] }
  0x46   :  { %1092 = vmatpush.bf16.msrb.mxu0 %v2229_v62 }
  0x4a   :  { %1093 = vmatpush.bf16.msrb.mxu0 %v2221_v3 }
  0x4b   :  { %2166 = vmatmul.msk.bf16.gmra.mxu2 %vm242_vm0, %v2891_v49 }
  0x4e   :  { %1094 = vmatpush.bf16.msrb.mxu0 %v2213_v6  ;;  %v2611_v6 = vld [vmem:[#allocation5 + $0x1c4] sm:$0xf0] }
  0x4f   :  { %v2405_v7 = vor.u32 %v2611_v6, %v2404_v5  ;;  %v2308_v6 = vld [vmem:[#allocation5 + $0x100] sm:$0xf] }
  0x51   :  { %2151 = vmatmul.msk.bf16.gmra.mxu3 %vm242_vm0, %v2904_v53  ;;  %2155 = vmatmul.msk.bf16.gmra.mxu0 %vm242_vm0, %v2875_v32 }
  0x52   :  { %1095 = vmatpush.bf16.msrb.mxu0 %v2205_v9  ;;  %v2571_v9 = vld [vmem:[#allocation5 + $0x84] sm:$0xf0]  ;;  %1241 = vmatpush.bf16.msra.mxu3 %v2405_v7 }
  0x53   :  { %2159 = vmatmul.msk.bf16.gmra.mxu1 %vm242_vm0, %v2904_v53  ;;  %v2245_v13 = vor.u32 %v2571_v9, %v2244_v8  ;;  %v2587_v7 = vld [vmem:[#allocation5 + $0x104] sm:$0xf0] }
  0x56   :  { %1096 = vmatpush.bf16.msrb.mxu0 %v2197_v12  ;;  %v2597_v12 = vld [vmem:[#allocation5 + $0x154] sm:$0xf0] }
  0x5a   :  { %1097 = vmatpush.bf16.msrb.mxu0 %v2189_v15  ;;  %v2349_v15 = vor.u32 %v2597_v12, %v2348_v11 }
  0x5b   :  { %2167 = vmatmul.msk.bf16.gmra.mxu2 %vm242_vm0, %v2904_v53 }
  0x5c   :  { %1191 = vmatpush.bf16.msrb.mxu2 %v2349_v15 }
  0x5e   :  { %1098 = vmatpush.bf16.msrb.mxu0 %v2181_v21 }
  0x60   :  { %1192 = vmatpush.bf16.msrb.mxu2 %v2341_v34 }
  0x61   :  { %2152 = vmatmul.msk.bf16.gmra.mxu3 %vm242_vm0, %v2917_v54  ;;  %2162 = vmatmul.msk.bf16.vlgmr.msra.gmra.mxu0 %vm242_vm0, %v2859_v25 }
  0x63   :  { %2160 = vmatmul.msk.bf16.gmra.mxu1 %vm242_vm0, %v2917_v54 }
  0x6b   :  { %2168 = vmatmul.msk.bf16.gmra.mxu2 %vm242_vm0, %v2917_v54 }
  0x71   :  { %2153 = vmatmul.msk.bf16.gmra.mxu3 %vm242_vm0, %v2930_v58  ;;  %2163 = vmatmul.msk.bf16.gmra.mxu0 %vm242_vm0, %v2875_v32 }
  0x73   :  { %2161 = vmatmul.msk.bf16.gmra.mxu1 %vm242_vm0, %v2930_v58 }
  0x7b   :  { %2169 = vmatmul.msk.bf16.gmra.mxu2 %vm242_vm0, %v2930_v58 }
  0x81   :  { %2170 = vmatmul.msk.bf16.vlgmr.msrb.gmra.mxu3 %vm242_vm0, %v2859_v25  ;;  %v2292_v25 = vld [vmem:[#allocation5 + $0xe0] sm:$0xf] }
  0x82   :  { %v2293_v28 = vor.u32 %v2583_v27, %v2292_v25  ;;  %v2396_v25 = vld [vmem:[#allocation5 + $0x1b0] sm:$0xf]  ;;  %v2609_v27 = vld [vmem:[#allocation5 + $0x1b4] sm:$0xf0] }
  0x84   :  { %1141 = vmatpush.bf16.msrb.mxu1 %v2293_v28  ;;  %v2397_v28 = vor.u32 %v2609_v27, %v2396_v25 }
  0x86   :  { %1242 = vmatpush.bf16.msra.mxu3 %v2397_v28 }
  0x88   :  { %1142 = vmatpush.bf16.msrb.mxu1 %v2285_v36 }
  0x91   :  { %2171 = vmatmul.msk.bf16.gmra.mxu3 %vm242_vm0, %v2875_v32  ;;  %v2579_v32 = vld [vmem:[#allocation5 + $0xc4] sm:$0xf0] }
  0x92   :  { %v2277_v41 = vor.u32 %v2579_v32, %v2276_v39  ;;  %v2333_v32 = vor.u32 %v2593_v38, %v2332_v37 }
  0x94   :  { %1143 = vmatpush.bf16.msrb.mxu1 %v2277_v41  ;;  %1193 = vmatpush.bf16.msrb.mxu2 %v2333_v32 }
  0x98   :  { %1144 = vmatpush.bf16.msrb.mxu1 %v2269_v46  ;;  %v2591_v46 = vld [vmem:[#allocation5 + $0x124] sm:$0xf0] }
  0x9c   :  { %1145 = vmatpush.bf16.msrb.mxu1 %v2261_v55 }
  0x9e   :  { %v276_v45 = vpop.f32.mrf.mxu0 }
  0x9f   :  { %v473_v50 = vmul.f32 %v2954_v47, %v276_v45  ;;  %v2324_v45 = vld [vmem:[#allocation5 + $0x120] sm:$0xf] }
  0xa0   :  { %v2988_v40 = vpop.f32.mrf.mxu1 }
  0xa1   :  { %2172 = vmatmul.msk.bf16.gmra.mxu3 %vm242_vm0, %v2864_v26  ;;  %v547_v62 = vadd.f32 %v2965_v56, %v473_v50  ;;  %v2253_v26 = vor.u32 %v2573_v0, %v2252_v63  ;;  %v2325_v50 = vor.u32 %v2591_v46, %v2324_v45  ;;  %v2317_v63 = vor.u32 %v2589_v61, %v2316_v59 }
  0xa3   :  { %v611_v3 = vmax.f32 %v547_v62, 0.0  ;;  %1146 = vmatpush.bf16.msrb.mxu1 %v2253_v26  ;;  %1194 = vmatpush.bf16.msrb.mxu2 %v2325_v50 }
  0xa4   :  { %v2967_v60 = vpop.f32.mrf.mxu3 }
  0xa5   :  { %v489_v51 = vmul.f32 %v2954_v47, %v2967_v60 }
  0xa6   :  { %v278_v1 = vpop.f32.mrf.mxu0 }
  0xa7   :  { %v477_v2 = vmul.f32 %v2954_v47, %v278_v1  ;;  %1147 = vmatpush.bf16.msrb.mxu1 %v2245_v13  ;;  %1195 = vmatpush.bf16.msrb.mxu2 %v2317_v63 }
  0xa8   :  { %v337_v1 = vpop.f32.mrf.mxu1 }
  0xa9   :  { %v551_v4 = vadd.f32 %v2965_v56, %v477_v2 }
  0xab   :  { %v615_v10 = vmax.f32 %v551_v4, 0.0  ;;  %v2607_v4 = vld [vmem:[#allocation5 + $0x1a4] sm:$0xf0] }
  0xac   :  { %v288_v14 = vpop.f32.mrf.mxu3 }
  0xad   :  { %v2972_v16 = vpack.c.bf16 %v615_v10, %v611_v3  ;;  %v493_v41 = vmul.f32 %v2954_v47, %v288_v14  ;;  %v2388_v3 = vld [vmem:[#allocation5 + $0x1a0] sm:$0xf]  ;;  %v2309_v10 = vor.u32 %v2587_v7, %v2308_v6  ;;  %v2603_v6 = vld [vmem:[#allocation5 + $0x184] sm:$0xf0] }
  0xae   :  { %v281_v17 = vpop.f32.mrf.mxu0  ;;  %v2389_v5 = vor.u32 %v2607_v4, %v2388_v3  ;;  %v3038_v50 = vpop.f32.mrf.mxu2 }
  0xaf   :  { %1099 = vmatmul.bf16.vlgmr.msrb.gmra.mxu0 %v2972_v16  ;;  %v481_v18 = vmul.f32 %v2954_v47, %v281_v17  ;;  %v567_v55 = vadd.f32 %v2965_v56, %v493_v41  ;;  %1196 = vmatpush.bf16.msrb.mxu2 %v2309_v10 }
  0xb0   :  { %1243 = vmatpush.bf16.msra.mxu3 %v2389_v5  ;;  %v2372_v5 = vld [vmem:[#allocation5 + $0x180] sm:$0xf] }
  0xb1   :  { %2173 = vmatmul.msk.bf16.gmra.mxu3 %vm242_vm0, %v2880_v33  ;;  %v555_v20 = vadd.f32 %v2965_v56, %v481_v18  ;;  %v2984_v33 = vperm.slane %v2951_v42, 1  ;;  %v631_v60 = vmax.f32 %v567_v55, 0.0  ;;  %v340_v18 = vpop.f32.mrf.mxu1 }
  0xb3   :  { %v619_v23 = vmax.f32 %v555_v20, 0.0  ;;  %v490_v45 = vmul.f32 %v2984_v33, %v2988_v40  ;;  %v494_v46 = vmul.f32 %v2984_v33, %v337_v1 }
  0xb4   :  { %v2978_v19 = vpop.f32.mrf.mxu3 }
  0xb5   :  { %v497_v20 = vmul.f32 %v2954_v47, %v2978_v19  ;;  %v564_v59 = vadd.f32 %v2994_v44, %v490_v45  ;;  %v568_v61 = vadd.f32 %v2994_v44, %v494_v46 }
  0xb6   :  { %v283_v21 = vpop.f32.mrf.mxu0  ;;  %v3060_v7 = vpop.f32.mrf.mxu2 }
  0xb7   :  { %v485_v22 = vmul.f32 %v2954_v47, %v283_v21  ;;  %v571_v25 = vadd.f32 %v2965_v56, %v497_v20 }
  0xb9   :  { %v559_v24 = vadd.f32 %v2965_v56, %v485_v22  ;;  %v342_v38 = vpop.f32.mrf.mxu1 }
  0xbb   :  { %v623_v31 = vmax.f32 %v559_v24, 0.0 }
  0xbc   :  { %v293_v35 = vpop.f32.mrf.mxu3 }
  0xbd   :  { %v2986_v36 = vpack.c.bf16 %v623_v31, %v619_v23  ;;  %v501_v15 = vmul.f32 %v2954_v47, %v293_v35  ;;  %v2605_v31 = vld [vmem:[#allocation5 + $0x194] sm:$0xf0]  ;;  %v635_v35 = vmax.f32 %v571_v25, 0.0  ;;  %v502_v25 = vmul.f32 %v2984_v33, %v342_v38  ;;  %v2600_v38 = vld [vmem:[#allocation5 + $0x174] sm:$0xf] }
  0xbe   :  { %v325_v39 = vpop.f32.mrf.mxu0 }
  0xbf   :  { %1104 = vmatmul.bf16.gmra.mxu0 %v2986_v36  ;;  %v474_v43 = vmul.f32 %v2984_v33, %v325_v39  ;;  %v575_v22 = vadd.f32 %v2965_v56, %v501_v15  ;;  %v3027_v39 = vperm.slane %v2951_v42, 2 }
  0xc1   :  { %2174 = vmatmul.msk.bf16.gmra.mxu3 %vm242_vm0, %v2891_v49  ;;  %v548_v57 = vadd.f32 %v2994_v44, %v474_v43  ;;  %v563_v49 = vadd.f32 %v2965_v56, %v489_v51  ;;  %v639_v30 = vmax.f32 %v575_v22, 0.0  ;;  %v3055_v1 = vpop.f32.mrf.mxu1  ;;  %v2568_v22 = vld [vmem:[#allocation5 + $0x74] sm:$0xf] }
  0xc3   :  { %v612_v26 = vmax.f32 %v548_v57, 0.0  ;;  %v627_v8 = vmax.f32 %v563_v49, 0.0  ;;  %v3029_v32 = vpack.c.bf16 %v639_v30, %v635_v35  ;;  %v3043_v57 = vperm.slane %v2959_v48, 2 }
  0xc4   :  { %v3000_v52 = vpop.f32.mrf.mxu3  ;;  %v576_v35 = vadd.f32 %v2994_v44, %v502_v25 }
  0xc5   :  { %v3007_v12 = vpack.c.bf16 %v631_v60, %v627_v8  ;;  %v505_v40 = vmul.f32 %v2954_v47, %v3000_v52  ;;  %v632_v60 = vmax.f32 %v568_v61, 0.0  ;;  %v2373_v8 = vor.u32 %v2603_v6, %v2372_v5  ;;  %v2584_v5 = vld [vmem:[#allocation5 + $0xf4] sm:$0xf]  ;;  %v2302_v6 = vld [vmem:[#allocation5 + $0xf8] sm:$0xf0] }
  0xc6   :  { %v327_v62 = vpop.f32.mrf.mxu0 }
  0xc7   :  { %v478_v0 = vmul.f32 %v2984_v33, %v327_v62 }
  0xc9   :  { %v552_v2 = vadd.f32 %v2994_v44, %v478_v0 }
  0xcb   :  { %v616_v9 = vmax.f32 %v552_v2, 0.0  ;;  %v628_v2 = vmax.f32 %v564_v59, 0.0 }
  0xcc   :  { %v298_v11 = vpop.f32.mrf.mxu3 }
  0xcd   :  { %v3009_v13 = vpack.c.bf16 %v616_v9, %v612_v26  ;;  %v509_v51 = vmul.f32 %v2954_v47, %v298_v11  ;;  %v579_v26 = vadd.f32 %v2965_v56, %v505_v40  ;;  %v3062_v11 = vpack.c.bf16 %v632_v60, %v628_v2  ;;  %v2222_v40 = vld [vmem:[#allocation5 + $0x58] sm:$0xf0]  ;;  %v2616_v60 = vld [vmem:[#allocation5 + $0x1f4] sm:$0xf] }
  0xce   :  { %v330_v14 = vpop.f32.mrf.mxu0 }
  0xcf   :  { %1109 = vmatmul.bf16.gmra.mxu0 %v3007_v12  ;;  %1148 = vmatmul.bf16.vlgmr.msrb.gmra.mxu1 %v3009_v13  ;;  %v482_v17 = vmul.f32 %v2984_v33, %v330_v14  ;;  %v583_v63 = vadd.f32 %v2965_v56, %v509_v51  ;;  %v643_v9 = vmax.f32 %v579_v26, 0.0 }
  0xd1   :  { %2175 = vmatmul.msk.bf16.gmra.mxu3 %vm242_vm0, %v2904_v53  ;;  %v556_v23 = vadd.f32 %v2994_v44, %v482_v17  ;;  %v2380_v53 = vld [vmem:[#allocation5 + $0x190] sm:$0xf]  ;;  %v647_v4 = vmax.f32 %v583_v63, 0.0 }
  0xd2   :  { %v2381_v34 = vor.u32 %v2605_v31, %v2380_v53  ;;  %v2566_v53 = vld [vmem:[#allocation5 + $0x64] sm:$0xf] }
  0xd3   :  { %v620_v28 = vmax.f32 %v556_v23, 0.0  ;;  %v3066_v15 = vpack.c.bf16 %v647_v4, %v643_v9  ;;  %v2238_v23 = vld [vmem:[#allocation5 + $0x78] sm:$0xf0] }
  0xd4   :  { %v3019_v21 = vpop.f32.mrf.mxu3  ;;  %1244 = vmatpush.bf16.msra.mxu3 %v2381_v34 }
  0xd5   :  { %v513_v31 = vmul.f32 %v2954_v47, %v3019_v21  ;;  %v2564_v21 = vld [vmem:[#allocation5 + $0x54] sm:$0xf] }
  0xd6   :  { %v332_v24 = vpop.f32.mrf.mxu0 }
  0xd7   :  { %v486_v27 = vmul.f32 %v2984_v33, %v332_v24  ;;  %v498_v24 = vmul.f32 %v2984_v33, %v340_v18  ;;  %v2230_v18 = vld [vmem:[#allocation5 + $0x68] sm:$0xf0]  ;;  %v587_v59 = vadd.f32 %v2965_v56, %v513_v31  ;;  %v506_v31 = vmul.f32 %v2984_v33, %v3055_v1 }
  0xd8   :  { %1245 = vmatpush.bf16.msra.mxu3 %v2373_v8  ;;  %v2233_v46 = vor.u32 %v2566_v53, %v2230_v18  ;;  %v2562_v8 = vld [vmem:[#allocation5 + $0x44] sm:$0xf]  ;;  %v2560_v53 = vld [vmem:[#allocation5 + $0x34] sm:$0xf]  ;;  %v2206_v18 = vld [vmem:[#allocation5 + $0x38] sm:$0xf0] }
  0xd9   :  { %v560_v29 = vadd.f32 %v2994_v44, %v486_v27  ;;  %v2241_v27 = vor.u32 %v2568_v22, %v2238_v23  ;;  %v572_v34 = vadd.f32 %v2994_v44, %v498_v24  ;;  %v651_v9 = vmax.f32 %v587_v59, 0.0  ;;  %v2214_v23 = vld [vmem:[#allocation5 + $0x48] sm:$0xf0] }
  0xda   :  { %v2305_v22 = vor.u32 %v2584_v5, %v2302_v6  ;;  %v2217_v25 = vor.u32 %v2562_v8, %v2214_v23  ;;  %v2358_v1 = vld [vmem:[#allocation5 + $0x168] sm:$0xf0]  ;;  %v2582_v23 = vld [vmem:[#allocation5 + $0xe4] sm:$0xf] }
  0xdb   :  { %v624_v19 = vmax.f32 %v560_v29, 0.0  ;;  %1287 = vmatpush.bf16.msra.mxu0 %v2241_v27  ;;  %v636_v61 = vmax.f32 %v572_v34, 0.0 }
  0xdc   :  { %v303_v37 = vpop.f32.mrf.mxu3  ;;  %1336 = vmatpush.bf16.msra.mxu1 %v2305_v22 }
  0xdd   :  { %v3031_v41 = vpack.c.bf16 %v624_v19, %v620_v28  ;;  %v347_v28 = vpop.f32.mrf.mxu1  ;;  %v517_v29 = vmul.f32 %v2954_v47, %v303_v37  ;;  %v3083_v19 = vpop.f32.mrf.mxu2 }
  0xde   :  { %v374_v43 = vpop.f32.mrf.mxu0  ;;  %v510_v34 = vmul.f32 %v2984_v33, %v347_v28 }
  0xdf   :  { %1114 = vmatmul.bf16.gmra.mxu0 %v3029_v32  ;;  %1153 = vmatmul.bf16.gmra.mxu1 %v3031_v41  ;;  %v475_v55 = vmul.f32 %v3027_v39, %v374_v43  ;;  %v2366_v43 = vld [vmem:[#allocation5 + $0x178] sm:$0xf0] }
  0xe0   :  { %v2369_v45 = vor.u32 %v2600_v38, %v2366_v43  ;;  %1288 = vmatpush.bf16.msra.mxu0 %v2233_v46  ;;  %v491_v38 = vmul.f32 %v3027_v39, %v3038_v50  ;;  %v495_v43 = vmul.f32 %v3027_v39, %v3060_v7  ;;  %v2598_v46 = vld [vmem:[#allocation5 + $0x164] sm:$0xf]  ;;  %v584_v50 = vadd.f32 %v2994_v44, %v510_v34 }
  0xe1   :  { %2176 = vmatmul.msk.bf16.gmra.mxu3 %vm242_vm0, %v2917_v54  ;;  %v549_v49 = vadd.f32 %v3043_v57, %v475_v55 }
  0xe2   :  { %1385 = vmatpush.bf16.msra.mxu2 %v2369_v45  ;;  %v565_v59 = vadd.f32 %v3043_v57, %v491_v38 }
  0xe3   :  { %v613_v52 = vmax.f32 %v549_v49, 0.0  ;;  %v640_v49 = vmax.f32 %v576_v35, 0.0  ;;  %v2209_v35 = vor.u32 %v2560_v53, %v2206_v18  ;;  %v2554_v53 = vld [vmem:[#allocation5 + $0x4] sm:$0xf] }
  0xe4   :  { %v3051_v62 = vpop.f32.mrf.mxu3 }
  0xe5   :  { %v521_v28 = vmul.f32 %v2954_v47, %v3051_v62  ;;  %v2190_v62 = vld [vmem:[#allocation5 + $0x18] sm:$0xf0] }
  0xe6   :  { %v376_v0 = vpop.f32.mrf.mxu0 }
  0xe7   :  { %v479_v54 = vmul.f32 %v3027_v39, %v376_v0  ;;  %v2225_v0 = vor.u32 %v2564_v21, %v2222_v40  ;;  %v580_v21 = vadd.f32 %v2994_v44, %v506_v31 }
  0xe9   :  { %v553_v3 = vadd.f32 %v3043_v57, %v479_v54  ;;  %1289 = vmatpush.bf16.msra.mxu0 %v2225_v0  ;;  %v2556_v0 = vld [vmem:[#allocation5 + $0x14] sm:$0xf] }
  0xeb   :  { %v617_v10 = vmax.f32 %v553_v3, 0.0  ;;  %v3092_v3 = vpop.f32.mrf.mxu1 }
  0xec   :  { %v3064_v14 = vpop.f32.mrf.mxu3 }
  0xed   :  { %v3068_v17 = vpack.c.bf16 %v617_v10, %v613_v52  ;;  %v2430_v52 = vld [vmem:[#allocation5 + $0x1f8] sm:$0xf0]  ;;  %v3094_v10 = vpack.c.bf16 %v640_v49, %v636_v61  ;;  %1290 = vmatpush.bf16.msra.mxu0 %v2217_v25  ;;  %v525_v45 = vmul.f32 %v2954_v47, %v3064_v14  ;;  %v569_v61 = vadd.f32 %v3043_v57, %v495_v43  ;;  %v2294_v25 = vld [vmem:[#allocation5 + $0xe8] sm:$0xf0] }
  0xee   :  { %v379_v20 = vpop.f32.mrf.mxu0  ;;  %v2433_v4 = vor.u32 %v2616_v60, %v2430_v52  ;;  %v3124_v49 = vperm.slane %v2951_v42, 3  ;;  %v2193_v52 = vor.u32 %v2556_v0, %v2190_v62  ;;  %v2614_v42 = vld [vmem:[#allocation5 + $0x1e4] sm:$0xf]  ;;  %v2297_v34 = vor.u32 %v2582_v23, %v2294_v25  ;;  %v2612_v25 = vld [vmem:[#allocation5 + $0x1d4] sm:$0xf] }
  0xef   :  { %1119 = vmatmul.bf16.gmra.mxu0 %v3066_v15  ;;  %1158 = vmatmul.bf16.gmra.mxu1 %v3062_v11  ;;  %v483_v30 = vmul.f32 %v3027_v39, %v379_v20  ;;  %v633_v5 = vmax.f32 %v569_v61, 0.0  ;;  %v2596_v61 = vld [vmem:[#allocation5 + $0x154] sm:$0xf] }
  0xf0   :  { %1197 = vmatmul.bf16.vlgmr.msrb.gmra.mxu2 %v3068_v17  ;;  %1434 = vmatpush.bf16.msrb.mxu3 %v2433_v4  ;;  %v629_v4 = vmax.f32 %v565_v59, 0.0 }
  0xf1   :  { %2177 = vmatmul.msk.bf16.gmra.mxu3 %vm242_vm0, %v2930_v58  ;;  %v591_v58 = vadd.f32 %v2965_v56, %v517_v29  ;;  %v557_v51 = vadd.f32 %v3043_v57, %v483_v30  ;;  %v3102_v30 = vpop.f32.mrf.mxu2  ;;  %1291 = vmatpush.bf16.msra.mxu0 %v2209_v35  ;;  %v2182_v35 = vld [vmem:[#allocation5 + $0x8] sm:$0xf0] }
  0xf2   :  { %v3135_v43 = vpack.c.bf16 %v633_v5, %v629_v4  ;;  %1337 = vmatpush.bf16.msra.mxu1 %v2297_v34  ;;  %v2286_v4 = vld [vmem:[#allocation5 + $0xd8] sm:$0xf0]  ;;  %v2578_v34 = vld [vmem:[#allocation5 + $0xc4] sm:$0xf] }
  0xf3   :  { %v621_v26 = vmax.f32 %v557_v51, 0.0  ;;  %v655_v54 = vmax.f32 %v591_v58, 0.0  ;;  %v2361_v58 = vor.u32 %v2598_v46, %v2358_v1  ;;  %v2558_v51 = vld [vmem:[#allocation5 + $0x24] sm:$0xf]  ;;  %v352_v14 = vpop.f32.mrf.mxu1 }
  0xf4   :  { %v3085_v37 = vpop.f32.mrf.mxu3 }
  0xf5   :  { %v3098_v27 = vpack.c.bf16 %v655_v54, %v651_v9  ;;  %1386 = vmatpush.bf16.msra.mxu2 %v2361_v58  ;;  %v648_v54 = vmax.f32 %v584_v50, 0.0  ;;  %v3131_v9 = vperm.slane %v2959_v48, 3  ;;  %v503_v50 = vmul.f32 %v3027_v39, %v3102_v30 }
  0xf6   :  { %v381_v55 = vpop.f32.mrf.mxu0 }
  0xf7   :  { %v487_v63 = vmul.f32 %v3027_v39, %v381_v55  ;;  %v2198_v55 = vld [vmem:[#allocation5 + $0x28] sm:$0xf0] }
  0xf8   :  { %v2201_v40 = vor.u32 %v2558_v51, %v2198_v55  ;;  %v514_v55 = vmul.f32 %v2984_v33, %v3092_v3 }
  0xf9   :  { %v561_v2 = vadd.f32 %v3043_v57, %v487_v63  ;;  %v599_v63 = vadd.f32 %v2965_v56, %v525_v45  ;;  %v3127_v60 = vpop.f32.mrf.mxu2  ;;  %v2185_v45 = vor.u32 %v2554_v53, %v2182_v35  ;;  %v2414_v53 = vld [vmem:[#allocation5 + $0x1d8] sm:$0xf0]  ;;  %v2278_v35 = vld [vmem:[#allocation5 + $0xc8] sm:$0xf0] }
  0xfa   :  { %1292 = vmatpush.bf16.msra.mxu0 %v2201_v40 }
  0xfb   :  { %v625_v20 = vmax.f32 %v561_v2, 0.0  ;;  %v644_v2 = vmax.f32 %v580_v21, 0.0  ;;  %v663_v6 = vmax.f32 %v599_v63, 0.0  ;;  %v355_v58 = vpop.f32.mrf.mxu1  ;;  %v499_v21 = vmul.f32 %v3027_v39, %v3083_v19  ;;  %v2350_v63 = vld [vmem:[#allocation5 + $0x158] sm:$0xf0] }
  0xfc   :  { %v3096_v24 = vpop.f32.mrf.mxu3  ;;  %v2353_v0 = vor.u32 %v2596_v61, %v2350_v63  ;;  %v588_v19 = vadd.f32 %v2994_v44, %v514_v55 }
  0xfd   :  { %v3100_v29 = vpack.c.bf16 %v625_v20, %v621_v26  ;;  %v595_v26 = vadd.f32 %v2965_v56, %v521_v28  ;;  %v2422_v20 = vld [vmem:[#allocation5 + $0x1e8] sm:$0xf0]  ;;  %v3133_v31 = vpack.c.bf16 %v648_v54, %v644_v2  ;;  %v518_v28 = vmul.f32 %v2984_v33, %v352_v14 }
  0xfe   :  { %v2425_v22 = vor.u32 %v2614_v42, %v2422_v20  ;;  %1293 = vmatpush.bf16.msra.mxu0 %v2193_v52  ;;  %v533_v40 = vmul.f32 %v2954_v47, %v3096_v24  ;;  %v529_v14 = vmul.f32 %v2954_v47, %v3085_v37  ;;  %v573_v30 = vadd.f32 %v3043_v57, %v499_v21  ;;  %v2580_v52 = vld [vmem:[#allocation5 + $0xd4] sm:$0xf] }
  0xff   :  { %1124 = vmatmul.bf16.gmra.mxu0 %v3098_v27  ;;  %1163 = vmatmul.bf16.gmra.mxu1 %v3094_v10  ;;  %v659_v18 = vmax.f32 %v595_v26, 0.0  ;;  %v592_v26 = vadd.f32 %v2994_v44, %v518_v28  ;;  %v577_v24 = vadd.f32 %v3043_v57, %v503_v50  ;;  %v652_v37 = vmax.f32 %v588_v19, 0.0 }
 0x100   :  { %1202 = vmatmul.bf16.gmra.mxu2 %v3100_v29  ;;  %1435 = vmatpush.bf16.msrb.mxu3 %v2425_v22  ;;  %v607_v54 = vadd.f32 %v2965_v56, %v533_v40  ;;  %v603_v47 = vadd.f32 %v2965_v56, %v529_v14  ;;  %v2281_v56 = vor.u32 %v2578_v34, %v2278_v35  ;;  %v2576_v40 = vld [vmem:[#allocation5 + $0xb4] sm:$0xf]  ;;  %v2610_v35 = vld [vmem:[#allocation5 + $0x1c4] sm:$0xf] }
 0x101   :  { %v3139_v1 = vpack.c.bf16 %v663_v6, %v659_v18  ;;  %v396_v3 = vpop.f32.mrf.mxu2  ;;  %1387 = vmatpush.bf16.msra.mxu2 %v2353_v0  ;;  %v656_v5 = vmax.f32 %v592_v26, 0.0  ;;  %v2289_v6 = vor.u32 %v2580_v52, %v2286_v4  ;;  %v641_v42 = vmax.f32 %v577_v24, 0.0  ;;  %v2594_v26 = vld [vmem:[#allocation5 + $0x144] sm:$0xf]  ;;  %v2262_v52 = vld [vmem:[#allocation5 + $0xa8] sm:$0xf0] }
 0x102   :  { %1294 = vmatpush.bf16.msra.mxu0 %v2185_v45  ;;  %v671_v22 = vmax.f32 %v607_v54, 0.0  ;;  %v2417_v18 = vor.u32 %v2612_v25, %v2414_v53  ;;  %v522_v50 = vmul.f32 %v2984_v33, %v355_v58  ;;  %v507_v0 = vmul.f32 %v3027_v39, %v3127_v60  ;;  %v2574_v54 = vld [vmem:[#allocation5 + $0xa4] sm:$0xf] }
 0x103   :  { %v357_v20 = vpop.f32.mrf.mxu1  ;;  %1338 = vmatpush.bf16.msra.mxu1 %v2289_v6  ;;  %v3166_v45 = vpack.c.bf16 %v656_v5, %v652_v37  ;;  %v511_v14 = vmul.f32 %v3027_v39, %v396_v3  ;;  %v2265_v60 = vor.u32 %v2574_v54, %v2262_v52  ;;  %v2592_v52 = vld [vmem:[#allocation5 + $0x134] sm:$0xf] }
 0x104   :  { %v423_v7 = vpop.f32.mrf.mxu3  ;;  %1436 = vmatpush.bf16.msrb.mxu3 %v2417_v18  ;;  %v526_v61 = vmul.f32 %v2984_v33, %v357_v20  ;;  %v596_v4 = vadd.f32 %v2994_v44, %v522_v50  ;;  %v581_v5 = vadd.f32 %v3043_v57, %v507_v0  ;;  %v2254_v20 = vld [vmem:[#allocation5 + $0x98] sm:$0xf0] }
 0x105   :  { %v476_v8 = vmul.f32 %v3124_v49, %v423_v7  ;;  %v585_v3 = vadd.f32 %v3043_v57, %v511_v14 }
 0x106   :  { %v600_v37 = vadd.f32 %v2994_v44, %v526_v61  ;;  %v645_v53 = vmax.f32 %v581_v5, 0.0 }
 0x107   :  { %v550_v48 = vadd.f32 %v3131_v9, %v476_v8  ;;  %v637_v8 = vmax.f32 %v573_v30, 0.0  ;;  %1339 = vmatpush.bf16.msra.mxu1 %v2281_v56  ;;  %v2342_v30 = vld [vmem:[#allocation5 + $0x148] sm:$0xf0]  ;;  %v649_v18 = vmax.f32 %v585_v3, 0.0 }
 0x108   :  { %v2345_v24 = vor.u32 %v2594_v26, %v2342_v30 }
 0x109   :  { %v614_v59 = vmax.f32 %v550_v48, 0.0  ;;  %v3168_v48 = vpop.f32.mrf.mxu2 }
 0x10a   :  { %1388 = vmatpush.bf16.msra.mxu2 %v2345_v24  ;;  %v515_v26 = vmul.f32 %v3027_v39, %v3168_v48 }
 0x10c   :  { %v425_v38 = vpop.f32.mrf.mxu3 }
 0x10d   :  { %v480_v46 = vmul.f32 %v3124_v49, %v425_v38  ;;  %v667_v38 = vmax.f32 %v603_v47, 0.0 }
 0x10f   :  { %v554_v51 = vadd.f32 %v3131_v9, %v480_v46  ;;  %1129 = vmatmul.bf16.gmra.mxu0 %v3139_v1  ;;  %1168 = vmatmul.bf16.gmra.mxu1 %v3133_v31  ;;  %v3174_v21 = vpack.c.bf16 %v671_v22, %v667_v38  ;;  %v660_v22 = vmax.f32 %v596_v4, 0.0  ;;  %v2406_v38 = vld [vmem:[#allocation5 + $0x1c8] sm:$0xf0]  ;;  %v2334_v4 = vld [vmem:[#allocation5 + $0x138] sm:$0xf0] }
 0x110   :  { %1207 = vmatmul.bf16.gmra.mxu2 %v3135_v43  ;;  %v2409_v56 = vor.u32 %v2610_v35, %v2406_v38 }
 0x111   :  { %v618_v7 = vmax.f32 %v554_v51, 0.0  ;;  %v3170_v51 = vpack.c.bf16 %v641_v42, %v637_v8  ;;  %v401_v8 = vpop.f32.mrf.mxu2  ;;  %v2572_v42 = vld [vmem:[#allocation5 + $0x94] sm:$0xf] }
 0x112   :  { %v2257_v25 = vor.u32 %v2572_v42, %v2254_v20  ;;  %1437 = vmatpush.bf16.msrb.mxu3 %v2409_v56  ;;  %v519_v30 = vmul.f32 %v3027_v39, %v401_v8 }
 0x113   :  { %v3156_v62 = vpack.c.bf16 %v618_v7, %v614_v59  ;;  %v2270_v59 = vld [vmem:[#allocation5 + $0xb8] sm:$0xf0] }
 0x114   :  { %v428_v2 = vpop.f32.mrf.mxu3  ;;  %v2273_v63 = vor.u32 %v2576_v40, %v2270_v59  ;;  %v3195_v59 = vpack.c.bf16 %v649_v18, %v645_v53  ;;  %v593_v48 = vadd.f32 %v3043_v57, %v519_v30  ;;  %v2398_v53 = vld [vmem:[#allocation5 + $0x1b8] sm:$0xf0] }
 0x115   :  { %1246 = vmatmul.bf16.vlgmr.msra.gmra.mxu3 %v3156_v62  ;;  %v484_v23 = vmul.f32 %v3124_v49, %v428_v2  ;;  %v360_v2 = vpop.f32.mrf.mxu1 }
 0x116   :  { %1340 = vmatpush.bf16.msra.mxu1 %v2273_v63  ;;  %v530_v14 = vmul.f32 %v2984_v33, %v360_v2  ;;  %v657_v42 = vmax.f32 %v593_v48, 0.0  ;;  %v2586_v48 = vld [vmem:[#allocation5 + $0x104] sm:$0xf] }
 0x117   :  { %v558_v55 = vadd.f32 %v3131_v9, %v484_v23  ;;  %v664_v23 = vmax.f32 %v600_v37, 0.0  ;;  %v2337_v37 = vor.u32 %v2592_v52, %v2334_v4 }
 0x118   :  { %v604_v2 = vadd.f32 %v2994_v44, %v530_v14 }
 0x119   :  { %v622_v19 = vmax.f32 %v558_v55, 0.0  ;;  %v2246_v55 = vld [vmem:[#allocation5 + $0x88] sm:$0xf0]  ;;  %1389 = vmatpush.bf16.msra.mxu2 %v2337_v37 }
 0x11a   :  { %1341 = vmatpush.bf16.msra.mxu1 %v2265_v60 }
 0x11c   :  { %v430_v46 = vpop.f32.mrf.mxu3 }
 0x11d   :  { %v488_v28 = vmul.f32 %v3124_v49, %v430_v46  ;;  %v2570_v46 = vld [vmem:[#allocation5 + $0x84] sm:$0xf] }
 0x11e   :  { %1342 = vmatpush.bf16.msra.mxu1 %v2257_v25  ;;  %v2249_v50 = vor.u32 %v2570_v46, %v2246_v55  ;;  %v2608_v25 = vld [vmem:[#allocation5 + $0x1b4] sm:$0xf] }
 0x11f   :  { %v562_v7 = vadd.f32 %v3131_v9, %v488_v28  ;;  %1134 = vmatmul.bf16.gmra.mxu0 %v3174_v21  ;;  %1173 = vmatmul.bf16.gmra.mxu1 %v3166_v45  ;;  %v3193_v28 = vpack.c.bf16 %v664_v23, %v660_v22 }
 0x120   :  { %1212 = vmatmul.bf16.gmra.mxu2 %v3170_v51 }
 0x121   :  { %v626_v58 = vmax.f32 %v562_v7, 0.0  ;;  %v362_v7 = vpop.f32.mrf.mxu1 }
 0x122   :  { %1343 = vmatpush.bf16.msra.mxu1 %v2249_v50 }
 0x123   :  { %v3186_v47 = vpack.c.bf16 %v626_v58, %v622_v19  ;;  %v534_v19 = vmul.f32 %v2984_v33, %v362_v7  ;;  %v404_v58 = vpop.f32.mrf.mxu2  ;;  %v589_v33 = vadd.f32 %v3043_v57, %v515_v26 }
 0x124   :  { %v433_v6 = vpop.f32.mrf.mxu3  ;;  %v523_v55 = vmul.f32 %v3027_v39, %v404_v58  ;;  %v2588_v58 = vld [vmem:[#allocation5 + $0x114] sm:$0xf] }
 0x125   :  { %1251 = vmatmul.bf16.gmra.mxu3 %v3186_v47  ;;  %v492_v34 = vmul.f32 %v3124_v49, %v433_v6  ;;  %v668_v6 = vmax.f32 %v604_v2, 0.0  ;;  %v653_v8 = vmax.f32 %v589_v33, 0.0  ;;  %v2390_v33 = vld [vmem:[#allocation5 + $0x1a8] sm:$0xf0] }
 0x126   :  { %v597_v30 = vadd.f32 %v3043_v57, %v523_v55 }
 0x127   :  { %v566_v61 = vadd.f32 %v3131_v9, %v492_v34  ;;  %v3220_v35 = vpack.c.bf16 %v657_v42, %v653_v8 }
 0x128   :  { %v661_v4 = vmax.f32 %v597_v30, 0.0 }
 0x129   :  { %v630_v24 = vmax.f32 %v566_v61, 0.0  ;;  %v2590_v61 = vld [vmem:[#allocation5 + $0x124] sm:$0xf] }
 0x12b   :  { %v406_v23 = vpop.f32.mrf.mxu2 }
 0x12c   :  { %v435_v40 = vpop.f32.mrf.mxu3  ;;  %v3215_v20 = vpop.f32.mrf.mxu0  ;;  %v527_v50 = vmul.f32 %v3027_v39, %v406_v23 }
 0x12d   :  { %v496_v63 = vmul.f32 %v3124_v49, %v435_v40 }
 0x12f   :  { %v570_v0 = vadd.f32 %v3131_v9, %v496_v63  ;;  %1178 = vmatmul.bf16.gmra.mxu1 %v3193_v28  ;;  %1295 = vmatmul.bf16.vlgmr.msra.gmra.mxu0 %v2972_v16  ;;  %v608_v16 = vadd.f32 %v2994_v44, %v534_v19  ;;  %v2401_v44 = vor.u32 %v2608_v25, %v2398_v53  ;;  %v2326_v63 = vld [vmem:[#allocation5 + $0x128] sm:$0xf0] }
 0x130   :  { %1217 = vmatmul.bf16.gmra.mxu2 %v3195_v59 }
 0x131   :  { %v634_v54 = vmax.f32 %v570_v0, 0.0  ;;  %v672_v3 = vmax.f32 %v608_v16, 0.0  ;;  %1438 = vmatpush.bf16.msrb.mxu3 %v2401_v44  ;;  %v2329_v0 = vor.u32 %v2590_v61, %v2326_v63  ;;  %v2606_v16 = vld [vmem:[#allocation5 + $0x1a4] sm:$0xf] }
 0x133   :  { %v3209_v60 = vpack.c.bf16 %v634_v54, %v630_v24  ;;  %v3218_v18 = vpack.c.bf16 %v672_v3, %v668_v6  ;;  %v409_v26 = vpop.f32.mrf.mxu2  ;;  %1390 = vmatpush.bf16.msra.mxu2 %v2329_v0  ;;  %v2318_v54 = vld [vmem:[#allocation5 + $0x118] sm:$0xf0]  ;;  %v2310_v6 = vld [vmem:[#allocation5 + $0x108] sm:$0xf0] }
 0x134   :  { %v438_v5 = vpop.f32.mrf.mxu3  ;;  %v3230_v14 = vpop.f32.mrf.mxu0  ;;  %v2321_v52 = vor.u32 %v2588_v58, %v2318_v54  ;;  %v2313_v3 = vor.u32 %v2586_v48, %v2310_v6  ;;  %v2374_v48 = vld [vmem:[#allocation5 + $0x188] sm:$0xf0] }
 0x135   :  { %1256 = vmatmul.bf16.gmra.mxu3 %v3209_v60  ;;  %v500_v22 = vmul.f32 %v3124_v49, %v438_v5  ;;  %v2393_v5 = vor.u32 %v2606_v16, %v2390_v33 }
 0x137   :  { %v574_v38 = vadd.f32 %v3131_v9, %v500_v22  ;;  %1391 = vmatpush.bf16.msra.mxu2 %v2321_v52  ;;  %1439 = vmatpush.bf16.msrb.mxu3 %v2393_v5  ;;  %v2602_v5 = vld [vmem:[#allocation5 + $0x184] sm:$0xf] }
 0x138   :  { %v2377_v6 = vor.u32 %v2602_v5, %v2374_v48  ;;  %v2620_v5 = vld [vmem:[#allocation7 + $0x10] sm:$0xff] }
 0x139   :  { %v638_v40 = vmax.f32 %v574_v38, 0.0 }
 0x13b   :  { %v411_v53 = vpop.f32.mrf.mxu2  ;;  %1392 = vmatpush.bf16.msra.mxu2 %v2313_v3 }
 0x13c   :  { %v440_v34 = vpop.f32.mrf.mxu3  ;;  %v3240_v22 = vpop.f32.mrf.mxu0  ;;  %v535_v38 = vmul.f32 %v3027_v39, %v411_v53 }
 0x13d   :  { %v504_v56 = vmul.f32 %v3124_v49, %v440_v34  ;;  %v531_v34 = vmul.f32 %v3027_v39, %v409_v26  ;;  %v2604_v39 = vld [vmem:[#allocation5 + $0x194] sm:$0xf]  ;;  %v2382_v26 = vld [vmem:[#allocation5 + $0x198] sm:$0xf0] }
 0x13e   :  { %v609_v61 = vadd.f32 %v3043_v57, %v535_v38  ;;  %v2385_v30 = vor.u32 %v2604_v39, %v2382_v26 }
 0x13f   :  { %v578_v46 = vadd.f32 %v3131_v9, %v504_v56  ;;  %1183 = vmatmul.bf16.gmra.mxu1 %v3218_v18  ;;  %1300 = vmatmul.bf16.gmra.mxu0 %v2986_v36  ;;  %v601_v36 = vadd.f32 %v3043_v57, %v527_v50 }
 0x140   :  { %1222 = vmatmul.bf16.gmra.mxu2 %v3220_v35  ;;  %v673_v63 = vmax.f32 %v609_v61, 0.0  ;;  %1440 = vmatpush.bf16.msrb.mxu3 %v2385_v30 }
 0x141   :  { %v642_v7 = vmax.f32 %v578_v46, 0.0  ;;  %v665_v37 = vmax.f32 %v601_v36, 0.0 }
 0x143   :  { %v3232_v19 = vpack.c.bf16 %v642_v7, %v638_v40  ;;  %v3238_v42 = vpack.c.bf16 %v665_v37, %v661_v4  ;;  %v605_v40 = vadd.f32 %v3043_v57, %v531_v34 }
 0x144   :  { %v443_v24 = vpop.f32.mrf.mxu3  ;;  %1441 = vmatpush.bf16.msrb.mxu3 %v2377_v6 }
 0x145   :  { %1261 = vmatmul.bf16.gmra.mxu3 %v3232_v19  ;;  %v508_v2 = vmul.f32 %v3124_v49, %v443_v24 }
 0x147   :  { %v582_v23 = vadd.f32 %v3131_v9, %v508_v2 }
 0x149   :  { %v646_v56 = vmax.f32 %v582_v23, 0.0 }
 0x14c   :  { %v445_v8 = vpop.f32.mrf.mxu3  ;;  %v3252_v50 = vpop.f32.mrf.mxu1 }
 0x14d   :  { %v512_v25 = vmul.f32 %v3124_v49, %v445_v8 }
 0x14f   :  { %v586_v44 = vadd.f32 %v3131_v9, %v512_v25  ;;  %1305 = vmatmul.bf16.gmra.mxu0 %v3007_v12  ;;  %1344 = vmatmul.bf16.vlgmr.msra.gmra.mxu1 %v3009_v13  ;;  %v3257_v12 = vpop.f32.mrf.mxu0  ;;  %v669_v13 = vmax.f32 %v605_v40, 0.0 }
 0x150   :  { %1227 = vmatmul.bf16.gmra.mxu2 %v3238_v42 }
 0x151   :  { %v650_v46 = vmax.f32 %v586_v44, 0.0  ;;  %v3260_v36 = vpack.c.bf16 %v673_v63, %v669_v13  ;;  %v2625_v44 = vld [vmem:[#allocation7 + $0x38] sm:$0xff]  ;;  %v2622_v63 = vld [vmem:[#allocation7 + $0x20] sm:$0xff] }
 0x152   :  { %1735 = vmatpush.bf16.msrb.mxu0 %v2625_v44 }
 0x153   :  { %v3250_v55 = vpack.c.bf16 %v650_v46, %v646_v56 }
 0x154   :  { %v448_v7 = vpop.f32.mrf.mxu3  ;;  %v3264_v57 = vpop.f32.mrf.mxu1 }
 0x155   :  { %1266 = vmatmul.bf16.gmra.mxu3 %v3250_v55  ;;  %v516_v0 = vmul.f32 %v3124_v49, %v448_v7  ;;  %v2624_v7 = vld [vmem:[#allocation7 + $0x30] sm:$0xff] }
 0x156   :  { %1736 = vmatpush.bf16.msrb.mxu0 %v2624_v7 }
 0x157   :  { %v590_v58 = vadd.f32 %v3131_v9, %v516_v0  ;;  %v3270_v4 = vpop.f32.mrf.mxu0 }
 0x159   :  { %v654_v37 = vmax.f32 %v590_v58, 0.0 }
 0x15c   :  { %v450_v24 = vpop.f32.mrf.mxu3  ;;  %v3275_v3 = vpop.f32.mrf.mxu1 }
 0x15d   :  { %v520_v54 = vmul.f32 %v3124_v49, %v450_v24 }
 0x15f   :  { %v594_v52 = vadd.f32 %v3131_v9, %v520_v54  ;;  %1310 = vmatmul.bf16.gmra.mxu0 %v3029_v32  ;;  %1349 = vmatmul.bf16.gmra.mxu1 %v3031_v41  ;;  %v3278_v41 = vpop.f32.mrf.mxu0  ;;  %v2621_v54 = vld [vmem:[#allocation7 + $0x18] sm:$0xff] }
 0x160   :  { %1232 = vmatmul.bf16.gmra.mxu2 %v3260_v36 }
 0x161   :  { %v658_v2 = vmax.f32 %v594_v52, 0.0 }
 0x163   :  { %v3272_v16 = vpack.c.bf16 %v658_v2, %v654_v37 }
 0x164   :  { %v453_v33 = vpop.f32.mrf.mxu3  ;;  %v3286_v56 = vpop.f32.mrf.mxu1 }
 0x165   :  { %1271 = vmatmul.bf16.gmra.mxu3 %v3272_v16  ;;  %v524_v32 = vmul.f32 %v3124_v49, %v453_v33 }
 0x167   :  { %v598_v23 = vadd.f32 %v3131_v9, %v524_v32  ;;  %v3290_v13 = vpop.f32.mrf.mxu0 }
 0x169   :  { %v662_v34 = vmax.f32 %v598_v23, 0.0 }
 0x16c   :  { %v455_v8 = vpop.f32.mrf.mxu3  ;;  %v3294_v0 = vpop.f32.mrf.mxu1 }
 0x16d   :  { %v528_v25 = vmul.f32 %v3124_v49, %v455_v8 }
 0x16f   :  { %v602_v53 = vadd.f32 %v3131_v9, %v528_v25  ;;  %1315 = vmatmul.bf16.gmra.mxu0 %v3066_v15  ;;  %1354 = vmatmul.bf16.gmra.mxu1 %v3062_v11  ;;  %v2623_v15 = vld [vmem:[#allocation7 + $0x28] sm:$0xff]  ;;  %v3298_v24 = vpop.f32.mrf.mxu0 }
 0x170   :  { %1393 = vmatmul.bf16.vlgmr.msra.gmra.mxu2 %v3068_v17  ;;  %1737 = vmatpush.bf16.msrb.mxu0 %v2623_v15 }
 0x171   :  { %v666_v38 = vmax.f32 %v602_v53, 0.0 }
 0x173   :  { %v1198_v46 = vpop.f32.mrf.mxu2  ;;  %v3288_v40 = vpack.c.bf16 %v666_v38, %v662_v34 }
 0x174   :  { %v458_v61 = vpop.f32.mrf.mxu3  ;;  %1738 = vmatpush.bf16.msrb.mxu0 %v2622_v63 }
 0x175   :  { %1276 = vmatmul.bf16.gmra.mxu3 %v3288_v40  ;;  %v532_v11 = vmul.f32 %v3124_v49, %v458_v61 }
 0x177   :  { %v606_v26 = vadd.f32 %v3131_v9, %v532_v11  ;;  %v3309_v48 = vpop.f32.mrf.mxu0 }
 0x178   :  { %1739 = vmatpush.bf16.msrb.mxu0 %v2621_v54  ;;  %v1157_v54 = vadd.f32 %v3286_v56, %v3257_v12 }
 0x179   :  { %v670_v52 = vmax.f32 %v606_v26, 0.0  ;;  %v1155_v26 = vadd.f32 %v3275_v3, %v3240_v22 }
 0x17b   :  { %v1200_v17 = vpop.f32.mrf.mxu2 }
 0x17c   :  { %v460_v39 = vpop.f32.mrf.mxu3  ;;  %1740 = vmatpush.bf16.msrb.mxu0 %v2620_v5 }
 0x17d   :  { %v536_v30 = vmul.f32 %v3124_v49, %v460_v39  ;;  %v3307_v49 = vpop.f32.mrf.mxu1 }
 0x17f   :  { %v610_v58 = vadd.f32 %v3131_v9, %v536_v30  ;;  %1320 = vmatmul.bf16.gmra.mxu0 %v3098_v27  ;;  %1359 = vmatmul.bf16.gmra.mxu1 %v3094_v10  ;;  %v2619_v9 = vld [vmem:[#allocation7 + $0x8] sm:$0xff]  ;;  %v2618_v27 = vld [vmem:[#allocation7] sm:$0xff]  ;;  %v3316_v32 = vpop.f32.mrf.mxu0 }
 0x180   :  { %1398 = vmatmul.bf16.gmra.mxu2 %v3100_v29  ;;  %1741 = vmatpush.bf16.msrb.mxu0 %v2619_v9  ;;  %v2633_v29 = vld [vmem:[#allocation7 + $0x78] sm:$0xff] }
 0x181   :  { %v674_v37 = vmax.f32 %v610_v58, 0.0  ;;  %1784 = vmatpush.bf16.msrb.mxu1 %v2633_v29 }
 0x183   :  { %v1203_v2 = vpop.f32.mrf.mxu2  ;;  %v3304_v33 = vpack.c.bf16 %v674_v37, %v670_v52 }
 0x184   :  { %1742 = vmatpush.bf16.msrb.mxu0 %v2618_v27  ;;  %v1204_v52 = vadd.f32 %v1203_v2, %v1155_v26  ;;  %v2631_v27 = vld [vmem:[#allocation7 + $0x68] sm:$0xff] }
 0x185   :  { %1281 = vmatmul.bf16.gmra.mxu3 %v3304_v33  ;;  %v3313_v6 = vpop.f32.mrf.mxu1 }
 0x187   :  { %v3332_v34 = vpop.f32.mrf.mxu0 }
 0x18b   :  { %v1205_v10 = vpop.f32.mrf.mxu2 }
 0x18c   :  { %v1206_v9 = vadd.f32 %v1205_v10, %v1157_v54 }
 0x18d   :  { %v3321_v25 = vpop.f32.mrf.mxu1 }
 0x18f   :  { %1325 = vmatmul.bf16.gmra.mxu0 %v3139_v1  ;;  %1364 = vmatmul.bf16.gmra.mxu1 %v3133_v31  ;;  %v1150_v1 = vadd.f32 %v3252_v50, %v3215_v20  ;;  %v3328_v31 = vld [vmem:[%s3593_s5] sm:$0x3]  ;;  %v2632_v20 = vld [vmem:[#allocation7 + $0x70] sm:$0xff] }
 0x190   :  { %1403 = vmatmul.bf16.gmra.mxu2 %v3135_v43  ;;  %v1152_v43 = vadd.f32 %v3264_v57, %v3230_v14  ;;  %v3335_v7 = vperm.slane %v3328_v31, 0  ;;  %v3342_v50 = vld [vmem:[%s3594_s6] sm:$0x3]  ;;  %1785 = vmatpush.bf16.msrb.mxu1 %v2632_v20  ;;  %v1162_v20 = vadd.f32 %v3307_v49, %v3278_v41 }
 0x191   :  { %v1199_v44 = vadd.f32 %v1198_v46, %v1150_v1  ;;  %v3347_v61 = vperm.slane %v3342_v50, 0 }
 0x192   :  { %v1201_v38 = vadd.f32 %v1200_v17, %v1152_v43  ;;  %v3356_v17 = vpop.f32.mrf.mxu0  ;;  %v1160_v43 = vadd.f32 %v3294_v0, %v3270_v4 }
 0x193   :  { %v3318_v8 = vpop.f32.mrf.mxu2 }
 0x194   :  { %1786 = vmatpush.bf16.msrb.mxu1 %v2631_v27 }
 0x195   :  { %1442 = vmatmul.bf16.vlgmr.msrb.gmra.mxu3 %v3156_v62 }
 0x198   :  { %v1247_v23 = vpop.f32.mrf.mxu3 }
 0x199   :  { %v1248_v62 = vadd.f32 %v1247_v23, %v1199_v44 }
 0x19a   :  { %v3367_v23 = vpop.f32.mrf.mxu0 }
 0x19b   :  { %v1210_v53 = vpop.f32.mrf.mxu2  ;;  %v1489_v46 = vmul.f32 %v3335_v7, %v1248_v62 }
 0x19f   :  { %1330 = vmatmul.bf16.gmra.mxu0 %v3174_v21  ;;  %1369 = vmatmul.bf16.gmra.mxu1 %v3166_v45  ;;  %v3352_v45 = vpop.f32.mrf.mxu1 }
 0x1a0   :  { %1408 = vmatmul.bf16.gmra.mxu2 %v3170_v51  ;;  %v1249_v14 = vpop.f32.mrf.mxu3  ;;  %v1527_v51 = vadd.f32 %v3347_v61, %v1489_v46 }
 0x1a1   :  { %v1250_v57 = vadd.f32 %v1249_v14, %v1201_v38  ;;  %v1209_v14 = vadd.f32 %v3318_v8, %v1160_v43 }
 0x1a2   :  { %v1559_v30 = vmax.f32 %v1527_v51, 0.0  ;;  %v3380_v44 = vpop.f32.mrf.mxu0 }
 0x1a3   :  { %v1491_v21 = vmul.f32 %v3335_v7, %v1250_v57  ;;  %v3350_v15 = vpop.f32.mrf.mxu2 }
 0x1a5   :  { %v1529_v11 = vadd.f32 %v3347_v61, %v1491_v21  ;;  %1447 = vmatmul.bf16.gmra.mxu3 %v3186_v47  ;;  %v2630_v21 = vld [vmem:[#allocation7 + $0x60] sm:$0xff] }
 0x1a6   :  { %1787 = vmatpush.bf16.msrb.mxu1 %v2630_v21 }
 0x1a7   :  { %v1561_v39 = vmax.f32 %v1529_v11, 0.0  ;;  %v3363_v5 = vpop.f32.mrf.mxu1 }
 0x1a8   :  { %v1252_v63 = vpop.f32.mrf.mxu3  ;;  %v1172_v43 = vadd.f32 %v3363_v5, %v3316_v32 }
 0x1a9   :  { %v1591_v37 = vpack.c.bf16 %v1561_v39, %v1559_v30  ;;  %v1253_v47 = vadd.f32 %v1252_v63, %v1204_v52  ;;  %v1165_v39 = vadd.f32 %v3313_v6, %v3290_v13  ;;  %v1167_v52 = vadd.f32 %v3321_v25, %v3298_v24 }
 0x1aa   :  { %v3393_v8 = vpop.f32.mrf.mxu0 }
 0x1ab   :  { %v1215_v58 = vpop.f32.mrf.mxu2  ;;  %v1493_v3 = vmul.f32 %v3335_v7, %v1253_v47 }
 0x1af   :  { %1374 = vmatmul.bf16.gmra.mxu1 %v3193_v28  ;;  %1743 = vmatmul.bf16.vlgmr.msrb.gmra.mxu0 %v1591_v37  ;;  %v1531_v28 = vadd.f32 %v3347_v61, %v1493_v3  ;;  %v3376_v10 = vpop.f32.mrf.mxu1  ;;  %v1214_v37 = vadd.f32 %v3350_v15, %v1165_v39 }
 0x1b0   :  { %1413 = vmatmul.bf16.gmra.mxu2 %v3195_v59  ;;  %v1254_v29 = vpop.f32.mrf.mxu3 }
 0x1b1   :  { %v1255_v22 = vadd.f32 %v1254_v29, %v1206_v9  ;;  %v1563_v38 = vmax.f32 %v1531_v28, 0.0  ;;  %v2629_v29 = vld [vmem:[#allocation7 + $0x58] sm:$0xff] }
 0x1b2   :  { %v3405_v47 = vpop.f32.mrf.mxu0  ;;  %1788 = vmatpush.bf16.msrb.mxu1 %v2629_v29 }
 0x1b3   :  { %v1495_v12 = vmul.f32 %v3335_v7, %v1255_v22  ;;  %v3371_v56 = vpop.f32.mrf.mxu2 }
 0x1b5   :  { %v1533_v2 = vadd.f32 %v3347_v61, %v1495_v12  ;;  %1452 = vmatmul.bf16.gmra.mxu3 %v3209_v60  ;;  %v1211_v60 = vadd.f32 %v1210_v53, %v1162_v20 }
 0x1b7   :  { %v1565_v1 = vmax.f32 %v1533_v2, 0.0  ;;  %v3387_v0 = vpop.f32.mrf.mxu1 }
 0x1b8   :  { %v1257_v59 = vpop.f32.mrf.mxu3 }
 0x1b9   :  { %v1593_v57 = vpack.c.bf16 %v1565_v1, %v1563_v38  ;;  %v1258_v46 = vadd.f32 %v1257_v59, %v1209_v14 }
 0x1ba   :  { %v3413_v2 = vpop.f32.mrf.mxu0 }
 0x1bb   :  { %v1220_v62 = vpop.f32.mrf.mxu2  ;;  %v1497_v51 = vmul.f32 %v3335_v7, %v1258_v46 }
 0x1bc   :  { %v1221_v14 = vadd.f32 %v1220_v62, %v1172_v43 }
 0x1bf   :  { %1379 = vmatmul.bf16.gmra.mxu1 %v3218_v18  ;;  %1748 = vmatmul.bf16.gmra.mxu0 %v1593_v57  ;;  %v1535_v18 = vadd.f32 %v3347_v61, %v1497_v51  ;;  %v3400_v54 = vpop.f32.mrf.mxu1  ;;  %v2628_v57 = vld [vmem:[#allocation7 + $0x50] sm:$0xff] }
 0x1c0   :  { %1418 = vmatmul.bf16.gmra.mxu2 %v3220_v35  ;;  %v1259_v11 = vpop.f32.mrf.mxu3  ;;  %1789 = vmatpush.bf16.msrb.mxu1 %v2628_v57 }
 0x1c1   :  { %v1260_v4 = vadd.f32 %v1259_v11, %v1211_v60  ;;  %v1567_v26 = vmax.f32 %v1535_v18, 0.0  ;;  %v1177_v18 = vadd.f32 %v3387_v0, %v3356_v17 }
 0x1c3   :  { %v1499_v41 = vmul.f32 %v3335_v7, %v1260_v4  ;;  %v3391_v49 = vpop.f32.mrf.mxu2 }
 0x1c5   :  { %v1537_v53 = vadd.f32 %v3347_v61, %v1499_v41  ;;  %1457 = vmatmul.bf16.gmra.mxu3 %v3232_v19  ;;  %v1216_v19 = vadd.f32 %v1215_v58, %v1167_v52  ;;  %v2627_v52 = vld [vmem:[#allocation7 + $0x48] sm:$0xff] }
 0x1c6   :  { %1790 = vmatpush.bf16.msrb.mxu1 %v2627_v52 }
 0x1c7   :  { %v1569_v63 = vmax.f32 %v1537_v53, 0.0  ;;  %v1181_v25 = vpop.f32.mrf.mxu1 }
 0x1c8   :  { %v1262_v35 = vpop.f32.mrf.mxu3 }
 0x1c9   :  { %v1595_v9 = vpack.c.bf16 %v1569_v63, %v1567_v26  ;;  %v1263_v27 = vadd.f32 %v1262_v35, %v1214_v37 }
 0x1cb   :  { %v1225_v30 = vpop.f32.mrf.mxu2  ;;  %v1501_v6 = vmul.f32 %v3335_v7, %v1263_v27 }
 0x1cc   :  { %v1226_v26 = vadd.f32 %v1225_v30, %v1177_v18 }
 0x1cd   :  { %v1539_v15 = vadd.f32 %v3347_v61, %v1501_v6  ;;  %v1182_v6 = vadd.f32 %v1181_v25, %v3380_v44 }
 0x1cf   :  { %1753 = vmatmul.bf16.gmra.mxu0 %v1595_v9  ;;  %v1571_v59 = vmax.f32 %v1539_v15, 0.0  ;;  %v3420_v60 = vpop.f32.mrf.mxu1 }
 0x1d0   :  { %1423 = vmatmul.bf16.gmra.mxu2 %v3238_v42  ;;  %v1264_v22 = vpop.f32.mrf.mxu3  ;;  %v1170_v42 = vadd.f32 %v3352_v45, %v3309_v48  ;;  %v3423_v48 = vpop.f32.mrf.mxu0 }
 0x1d1   :  { %v1265_v13 = vadd.f32 %v1264_v22, %v1216_v19  ;;  %v1180_v22 = vadd.f32 %v3400_v54, %v3367_v23 }
 0x1d2   :  { %v1219_v38 = vadd.f32 %v3371_v56, %v1170_v42 }
 0x1d3   :  { %v1503_v3 = vmul.f32 %v3335_v7, %v1265_v13  ;;  %v1228_v12 = vpop.f32.mrf.mxu2 }
 0x1d5   :  { %v1541_v24 = vadd.f32 %v3347_v61, %v1503_v3  ;;  %1462 = vmatmul.bf16.gmra.mxu3 %v3250_v55  ;;  %v1229_v3 = vadd.f32 %v1228_v12, %v1180_v22 }
 0x1d7   :  { %v1573_v28 = vmax.f32 %v1541_v24, 0.0  ;;  %v1186_v51 = vpop.f32.mrf.mxu1 }
 0x1d8   :  { %v1267_v58 = vpop.f32.mrf.mxu3  ;;  %v3434_v35 = vpop.f32.mrf.mxu0 }
 0x1d9   :  { %v1597_v20 = vpack.c.bf16 %v1573_v28, %v1571_v59  ;;  %v1268_v55 = vadd.f32 %v1267_v58, %v1219_v38 }
 0x1db   :  { %v1230_v1 = vpop.f32.mrf.mxu2  ;;  %v1505_v45 = vmul.f32 %v3335_v7, %v1268_v55  ;;  %v1185_v55 = vadd.f32 %v3420_v60, %v3393_v8 }
 0x1dc   :  { %v1231_v58 = vadd.f32 %v1230_v1, %v1182_v6 }
 0x1dd   :  { %v1543_v62 = vadd.f32 %v3347_v61, %v1505_v45 }
 0x1df   :  { %1758 = vmatmul.bf16.gmra.mxu0 %v1597_v20  ;;  %v1575_v41 = vmax.f32 %v1543_v62, 0.0 }
 0x1e0   :  { %1428 = vmatmul.bf16.gmra.mxu2 %v3260_v36  ;;  %v1269_v46 = vpop.f32.mrf.mxu3  ;;  %v1175_v36 = vadd.f32 %v3376_v10, %v3332_v34  ;;  %v1345_v10 = vpop.f32.mrf.mxu1 }
 0x1e1   :  { %v1270_v21 = vadd.f32 %v1269_v46, %v1221_v14  ;;  %v3441_v0 = vpop.f32.mrf.mxu0  ;;  %v1346_v60 = vadd.f32 %v1345_v10, %v3413_v2  ;;  %v2641_v10 = vld [vmem:[%s3598_s10 + $0x38] sm:$0xff] }
 0x1e2   :  { %v1224_v63 = vadd.f32 %v3391_v49, %v1175_v36  ;;  %1965 = vmatpush.bf16.msrb.mxu2 %v2641_v10  ;;  %v2638_v10 = vld [vmem:[%s3598_s10 + $0x20] sm:$0xff] }
 0x1e3   :  { %v1507_v32 = vmul.f32 %v3335_v7, %v1270_v21  ;;  %v1233_v5 = vpop.f32.mrf.mxu2  ;;  %v1187_v21 = vadd.f32 %v1186_v51, %v3405_v47 }
 0x1e4   :  { %v1234_v45 = vadd.f32 %v1233_v5, %v1185_v55 }
 0x1e5   :  { %v1545_v56 = vadd.f32 %v3347_v61, %v1507_v32  ;;  %1467 = vmatmul.bf16.gmra.mxu3 %v3272_v16 }
 0x1e7   :  { %v1577_v4 = vmax.f32 %v1545_v56, 0.0 }
 0x1e8   :  { %v1272_v11 = vpop.f32.mrf.mxu3  ;;  %v1347_v15 = vpop.f32.mrf.mxu1 }
 0x1e9   :  { %v1599_v39 = vpack.c.bf16 %v1577_v4, %v1575_v41  ;;  %v1273_v16 = vadd.f32 %v1272_v11, %v1224_v63  ;;  %v3447_v43 = vpop.f32.mrf.mxu0 }
 0x1eb   :  { %v1235_v53 = vpop.f32.mrf.mxu2  ;;  %v1509_v19 = vmul.f32 %v3335_v7, %v1273_v16  ;;  %v3467_v16 = vperm.slane %v3328_v31, 1 }
 0x1ec   :  { %v1236_v56 = vadd.f32 %v1235_v53, %v1187_v21 }
 0x1ed   :  { %v1547_v49 = vadd.f32 %v3347_v61, %v1509_v19 }
 0x1ef   :  { %1763 = vmatmul.bf16.gmra.mxu0 %v1599_v39  ;;  %v1579_v13 = vmax.f32 %v1547_v49, 0.0 }
 0x1f0   :  { %v1274_v37 = vpop.f32.mrf.mxu3  ;;  %v1350_v12 = vpop.f32.mrf.mxu1 }
 0x1f1   :  { %v1275_v9 = vadd.f32 %v1274_v37, %v1226_v26  ;;  %v3456_v57 = vpop.f32.mrf.mxu0 }
 0x1f3   :  { %v1511_v34 = vmul.f32 %v3335_v7, %v1275_v9  ;;  %v1394_v17 = vpop.f32.mrf.mxu2 }
 0x1f4   :  { %v1395_v51 = vadd.f32 %v1394_v17, %v1346_v60 }
 0x1f5   :  { %v1549_v27 = vadd.f32 %v3347_v61, %v1511_v34  ;;  %1472 = vmatmul.bf16.gmra.mxu3 %v3288_v40  ;;  %v2626_v40 = vld [vmem:[#allocation7 + $0x40] sm:$0xff] }
 0x1f6   :  { %1791 = vmatpush.bf16.msrb.mxu1 %v2626_v40 }
 0x1f7   :  { %v1581_v29 = vmax.f32 %v1549_v27, 0.0 }
 0x1f8   :  { %v1277_v30 = vpop.f32.mrf.mxu3  ;;  %v1352_v4 = vpop.f32.mrf.mxu1 }
 0x1f9   :  { %v1601_v24 = vpack.c.bf16 %v1581_v29, %v1579_v13  ;;  %v1278_v28 = vadd.f32 %v1277_v30, %v1229_v3  ;;  %v3461_v63 = vpop.f32.mrf.mxu0  ;;  %v1351_v29 = vadd.f32 %v1350_v12, %v3434_v35 }
 0x1fb   :  { %v1396_v42 = vpop.f32.mrf.mxu2  ;;  %v1513_v20 = vmul.f32 %v3335_v7, %v1278_v28 }
 0x1fd   :  { %v1551_v44 = vadd.f32 %v3347_v61, %v1513_v20 }
 0x1ff   :  { %1768 = vmatmul.bf16.gmra.mxu0 %v1601_v24  ;;  %v1583_v46 = vmax.f32 %v1551_v44, 0.0 }
 0x200   :  { %v1279_v59 = vpop.f32.mrf.mxu3  ;;  %v1355_v52 = vpop.f32.mrf.mxu1 }
 0x201   :  { %v1280_v38 = vadd.f32 %v1279_v59, %v1231_v58  ;;  %v3470_v19 = vpop.f32.mrf.mxu0  ;;  %v1353_v58 = vadd.f32 %v1352_v4, %v3441_v0  ;;  %v1356_v0 = vadd.f32 %v1355_v52, %v3447_v43 }
 0x203   :  { %v1515_v23 = vmul.f32 %v3335_v7, %v1280_v38  ;;  %v1399_v14 = vpop.f32.mrf.mxu2 }
 0x204   :  { %v1400_v3 = vadd.f32 %v1399_v14, %v1351_v29 }
 0x205   :  { %v1553_v54 = vadd.f32 %v3347_v61, %v1515_v23  ;;  %1477 = vmatmul.bf16.gmra.mxu3 %v3304_v33 }
 0x207   :  { %v1585_v1 = vmax.f32 %v1553_v54, 0.0 }
 0x208   :  { %v1282_v25 = vpop.f32.mrf.mxu3  ;;  %v1357_v30 = vpop.f32.mrf.mxu1 }
 0x209   :  { %v1603_v32 = vpack.c.bf16 %v1585_v1, %v1583_v46  ;;  %v1283_v62 = vadd.f32 %v1282_v25, %v1234_v45  ;;  %v1316_v14 = vpop.f32.mrf.mxu0 }
 0x20b   :  { %v1517_v36 = vmul.f32 %v3335_v7, %v1283_v62  ;;  %v1401_v18 = vpop.f32.mrf.mxu2 }
 0x20c   :  { %v1402_v28 = vadd.f32 %v1401_v18, %v1353_v58 }
 0x20d   :  { %v1555_v47 = vadd.f32 %v3347_v61, %v1517_v36 }
 0x20f   :  { %1773 = vmatmul.bf16.gmra.mxu0 %v1603_v32  ;;  %v1587_v39 = vmax.f32 %v1555_v47, 0.0 }
 0x210   :  { %v1284_v33 = vpop.f32.mrf.mxu3  ;;  %v1360_v59 = vpop.f32.mrf.mxu1 }
 0x211   :  { %v1285_v11 = vadd.f32 %v1284_v33, %v1236_v56  ;;  %v1358_v56 = vadd.f32 %v1357_v30, %v3456_v57  ;;  %v1318_v36 = vpop.f32.mrf.mxu0  ;;  %v1361_v57 = vadd.f32 %v1360_v59, %v3461_v63 }
 0x213   :  { %v1519_v41 = vmul.f32 %v3335_v7, %v1285_v11  ;;  %v1348_v7 = vadd.f32 %v1347_v15, %v3423_v48  ;;  %v1404_v9 = vpop.f32.mrf.mxu2  ;;  %v2639_v11 = vld [vmem:[%s3598_s10 + $0x28] sm:$0xff] }
 0x214   :  { %v1405_v55 = vadd.f32 %v1404_v9, %v1356_v0 }
 0x215   :  { %v1557_v8 = vadd.f32 %v3347_v61, %v1519_v41  ;;  %v1397_v34 = vadd.f32 %v1396_v42, %v1348_v7  ;;  %v3474_v61 = vperm.slane %v3342_v50, 1  ;;  %v2640_v42 = vld [vmem:[%s3598_s10 + $0x30] sm:$0xff] }
 0x216   :  { %1966 = vmatpush.bf16.msrb.mxu2 %v2640_v42  ;;  %v2637_v42 = vld [vmem:[%s3598_s10 + $0x18] sm:$0xff] }
 0x217   :  { %v1589_v53 = vmax.f32 %v1557_v8, 0.0 }
 0x218   :  { %v1443_v5 = vpop.f32.mrf.mxu3  ;;  %v1362_v21 = vpop.f32.mrf.mxu1 }
 0x219   :  { %v1444_v26 = vadd.f32 %v1443_v5, %v1395_v51  ;;  %v1605_v37 = vpack.c.bf16 %v1589_v53, %v1587_v39  ;;  %v1321_v7 = vpop.f32.mrf.mxu0 }
 0x21a   :  { %1967 = vmatpush.bf16.msrb.mxu2 %v2639_v11 }
 0x21b   :  { %v1490_v2 = vmul.f32 %v3467_v16, %v1444_v26  ;;  %v1406_v13 = vpop.f32.mrf.mxu2 }
 0x21c   :  { %v1407_v62 = vadd.f32 %v1406_v13, %v1358_v56 }
 0x21d   :  { %v1528_v48 = vadd.f32 %v3474_v61, %v1490_v2 }
 0x21e   :  { %1968 = vmatpush.bf16.msrb.mxu2 %v2638_v10 }
 0x21f   :  { %1778 = vmatmul.bf16.gmra.mxu0 %v1605_v37  ;;  %v1560_v22 = vmax.f32 %v1528_v48, 0.0  ;;  %v1363_v37 = vadd.f32 %v1362_v21, %v3470_v19 }
 0x220   :  { %v1445_v31 = vpop.f32.mrf.mxu3  ;;  %v1365_v8 = vpop.f32.mrf.mxu1 }
 0x221   :  { %v1446_v27 = vadd.f32 %v1445_v31, %v1397_v34  ;;  %v1323_v30 = vpop.f32.mrf.mxu0  ;;  %v1366_v19 = vadd.f32 %v1365_v8, %v1316_v14 }
 0x222   :  { %1969 = vmatpush.bf16.msrb.mxu2 %v2637_v42 }
 0x223   :  { %v1492_v17 = vmul.f32 %v3467_v16, %v1446_v27  ;;  %v1409_v20 = vpop.f32.mrf.mxu2 }
 0x224   :  { %v1410_v39 = vadd.f32 %v1409_v20, %v1361_v57 }
 0x225   :  { %v1530_v49 = vadd.f32 %v3474_v61, %v1492_v17 }
 0x227   :  { %v1562_v50 = vmax.f32 %v1530_v49, 0.0 }
 0x228   :  { %v1448_v6 = vpop.f32.mrf.mxu3  ;;  %v1367_v9 = vpop.f32.mrf.mxu1 }
 0x229   :  { %v1592_v24 = vpack.c.bf16 %v1562_v50, %v1560_v22  ;;  %v1449_v15 = vadd.f32 %v1448_v6, %v1400_v3  ;;  %v1368_v58 = vadd.f32 %v1367_v9, %v1318_v36 }
 0x22b   :  { %1792 = vmatmul.bf16.vlgmr.msrb.gmra.mxu1 %v1592_v24  ;;  %v1494_v40 = vmul.f32 %v3467_v16, %v1449_v15  ;;  %v1411_v32 = vpop.f32.mrf.mxu2 }
 0x22c   :  { %v1412_v34 = vadd.f32 %v1411_v32, %v1363_v37  ;;  %v2635_v37 = vld [vmem:[%s3598_s10 + $0x8] sm:$0xff] }
 0x22d   :  { %v1532_v23 = vadd.f32 %v3474_v61, %v1494_v40 }
 0x22f   :  { %v1564_v12 = vmax.f32 %v1532_v23, 0.0 }
 0x230   :  { %v1450_v38 = vpop.f32.mrf.mxu3  ;;  %v1370_v50 = vpop.f32.mrf.mxu1 }
 0x231   :  { %v1451_v35 = vadd.f32 %v1450_v38, %v1402_v28  ;;  %v1326_v38 = vpop.f32.mrf.mxu0 }
 0x233   :  { %v1496_v54 = vmul.f32 %v3467_v16, %v1451_v35  ;;  %v1414_v47 = vpop.f32.mrf.mxu2 }
 0x234   :  { %v1415_v6 = vadd.f32 %v1414_v47, %v1366_v19 }
 0x235   :  { %v1534_v44 = vadd.f32 %v3474_v61, %v1496_v54 }
 0x237   :  { %v1566_v25 = vmax.f32 %v1534_v44, 0.0 }
 0x238   :  { %v1453_v1 = vpop.f32.mrf.mxu3  ;;  %v1372_v20 = vpop.f32.mrf.mxu1 }
 0x239   :  { %v1594_v46 = vpack.c.bf16 %v1566_v25, %v1564_v12  ;;  %v1454_v45 = vadd.f32 %v1453_v1, %v1405_v55  ;;  %v1371_v12 = vadd.f32 %v1370_v50, %v1321_v7  ;;  %v1328_v21 = vpop.f32.mrf.mxu0  ;;  %v1373_v56 = vadd.f32 %v1372_v20, %v1323_v30 }
 0x23b   :  { %1797 = vmatmul.bf16.gmra.mxu1 %v1594_v46  ;;  %v1498_v33 = vmul.f32 %v3467_v16, %v1454_v45  ;;  %v1416_v31 = vpop.f32.mrf.mxu2 }
 0x23c   :  { %v1417_v28 = vadd.f32 %v1416_v31, %v1368_v58 }
 0x23d   :  { %v1536_v41 = vadd.f32 %v3474_v61, %v1498_v33 }
 0x23f   :  { %v1568_v5 = vmax.f32 %v1536_v41, 0.0 }
 0x240   :  { %v1455_v43 = vpop.f32.mrf.mxu3  ;;  %v1375_v32 = vpop.f32.mrf.mxu1 }
 0x241   :  { %v1456_v4 = vadd.f32 %v1455_v43, %v1407_v62  ;;  %v2636_v43 = vld [vmem:[%s3598_s10 + $0x10] sm:$0xff]  ;;  %v1331_v8 = vpop.f32.mrf.mxu0  ;;  %v1376_v57 = vadd.f32 %v1375_v32, %v1326_v38 }
 0x242   :  { %1970 = vmatpush.bf16.msrb.mxu2 %v2636_v43 }
 0x243   :  { %v1500_v18 = vmul.f32 %v3467_v16, %v1456_v4  ;;  %v1419_v24 = vpop.f32.mrf.mxu2 }
 0x244   :  { %v1420_v55 = vadd.f32 %v1419_v24, %v1371_v12 }
 0x245   :  { %v1538_v60 = vadd.f32 %v3474_v61, %v1500_v18 }
 0x246   :  { %1971 = vmatpush.bf16.msrb.mxu2 %v2635_v37 }
 0x247   :  { %v1570_v51 = vmax.f32 %v1538_v60, 0.0 }
 0x248   :  { %v1458_v53 = vpop.f32.mrf.mxu3  ;;  %v1377_v47 = vpop.f32.mrf.mxu1 }
 0x249   :  { %v1596_v26 = vpack.c.bf16 %v1570_v51, %v1568_v5  ;;  %v1459_v52 = vadd.f32 %v1458_v53, %v1410_v39  ;;  %v1378_v9 = vadd.f32 %v1377_v47, %v1328_v21  ;;  %v3540_v21 = vld [vmem:[%s3596_s8] ss:$0 sm:$0xff] }
 0x24b   :  { %1802 = vmatmul.bf16.gmra.mxu1 %v1596_v26  ;;  %v1502_v2 = vmul.f32 %v3467_v16, %v1459_v52  ;;  %v1421_v44 = vpop.f32.mrf.mxu2 }
 0x24c   :  { %v1422_v33 = vadd.f32 %v1421_v44, %v1373_v56 }
 0x24d   :  { %v1540_v48 = vadd.f32 %v3474_v61, %v1502_v2 }
 0x24f   :  { %v1572_v29 = vmax.f32 %v1540_v48, 0.0 }
 0x250   :  { %v1460_v63 = vpop.f32.mrf.mxu3  ;;  %v1380_v31 = vpop.f32.mrf.mxu1 }
 0x251   :  { %v1461_v27 = vadd.f32 %v1460_v63, %v1412_v34  ;;  %v1333_v34 = vpop.f32.mrf.mxu0  ;;  %v1381_v19 = vadd.f32 %v1380_v31, %v1331_v8 }
 0x253   :  { %v1504_v17 = vmul.f32 %v3467_v16, %v1461_v27  ;;  %v1424_v62 = vpop.f32.mrf.mxu2 }
 0x254   :  { %v1425_v26 = vadd.f32 %v1424_v62, %v1376_v57 }
 0x255   :  { %v1542_v49 = vadd.f32 %v3474_v61, %v1504_v17 }
 0x257   :  { %v1574_v22 = vmax.f32 %v1542_v49, 0.0 }
 0x258   :  { %v1463_v13 = vpop.f32.mrf.mxu3  ;;  %v1382_v24 = vpop.f32.mrf.mxu1 }
 0x259   :  { %v1598_v3 = vpack.c.bf16 %v1574_v22, %v1572_v29  ;;  %v1464_v15 = vadd.f32 %v1463_v13, %v1415_v6 }
 0x25b   :  { %1807 = vmatmul.bf16.gmra.mxu1 %v1598_v3  ;;  %v1506_v40 = vmul.f32 %v3467_v16, %v1464_v15  ;;  %v1426_v53 = vpop.f32.mrf.mxu2  ;;  %v1744_v3 = vpop.f32.mrf.mxu0 }
 0x25c   :  { %v1427_v2 = vadd.f32 %v1426_v53, %v1378_v9 }
 0x25d   :  { %v1544_v23 = vadd.f32 %v3474_v61, %v1506_v40 }
 0x25f   :  { %v1576_v25 = vmax.f32 %v1544_v23, 0.0 }
 0x260   :  { %v1465_v59 = vpop.f32.mrf.mxu3 }
 0x261   :  { %v1466_v35 = vadd.f32 %v1465_v59, %v1417_v28  ;;  %v1383_v28 = vadd.f32 %v1382_v24, %v1333_v34  ;;  %v2634_v59 = vld [vmem:[%s3598_s10] sm:$0xff] }
 0x262   :  { %1972 = vmatpush.bf16.msrb.mxu2 %v2634_v59 }
 0x263   :  { %v1508_v54 = vmul.f32 %v3467_v16, %v1466_v35  ;;  %v1429_v48 = vpop.f32.mrf.mxu2 }
 0x264   :  { %v1430_v13 = vadd.f32 %v1429_v48, %v1381_v19 }
 0x265   :  { %v1546_v0 = vadd.f32 %v3474_v61, %v1508_v54  ;;  %v1746_v54 = vpop.f32.mrf.mxu0 }
 0x267   :  { %v1578_v1 = vmax.f32 %v1546_v0, 0.0 }
 0x268   :  { %v1468_v14 = vpop.f32.mrf.mxu3 }
 0x269   :  { %v1600_v46 = vpack.c.bf16 %v1578_v1, %v1576_v25  ;;  %v1469_v45 = vadd.f32 %v1468_v14, %v1420_v55 }
 0x26b   :  { %1812 = vmatmul.bf16.gmra.mxu1 %v1600_v46  ;;  %v1510_v11 = vmul.f32 %v3467_v16, %v1469_v45  ;;  %v1431_v58 = vpop.f32.mrf.mxu2 }
 0x26c   :  { %v1432_v40 = vadd.f32 %v1431_v58, %v1383_v28 }
 0x26d   :  { %v1548_v41 = vadd.f32 %v3474_v61, %v1510_v11  ;;  %v1749_v1 = vpop.f32.mrf.mxu0 }
 0x26f   :  { %v1580_v5 = vmax.f32 %v1548_v41, 0.0 }
 0x270   :  { %v1470_v4 = vpop.f32.mrf.mxu3 }
 0x271   :  { %v1471_v36 = vadd.f32 %v1470_v4, %v1422_v33 }
 0x273   :  { %v1512_v18 = vmul.f32 %v3467_v16, %v1471_v36 }
 0x275   :  { %v1550_v60 = vadd.f32 %v3474_v61, %v1512_v18  ;;  %v1751_v14 = vpop.f32.mrf.mxu0 }
 0x277   :  { %v1582_v51 = vmax.f32 %v1550_v60, 0.0 }
 0x278   :  { %v1473_v39 = vpop.f32.mrf.mxu3 }
 0x279   :  { %v1602_v52 = vpack.c.bf16 %v1582_v51, %v1580_v5  ;;  %v1474_v7 = vadd.f32 %v1473_v39, %v1425_v26 }
 0x27b   :  { %1817 = vmatmul.bf16.gmra.mxu1 %v1602_v52  ;;  %v1514_v10 = vmul.f32 %v3467_v16, %v1474_v7 }
 0x27d   :  { %v1552_v17 = vadd.f32 %v3474_v61, %v1514_v10  ;;  %v1754_v56 = vpop.f32.mrf.mxu0 }
 0x27f   :  { %v1584_v29 = vmax.f32 %v1552_v17, 0.0 }
 0x280   :  { %v1475_v63 = vpop.f32.mrf.mxu3 }
 0x281   :  { %v1476_v27 = vadd.f32 %v1475_v63, %v1427_v2 }
 0x283   :  { %v1516_v49 = vmul.f32 %v3467_v16, %v1476_v27 }
 0x285   :  { %v1554_v30 = vadd.f32 %v3474_v61, %v1516_v49  ;;  %v1756_v8 = vpop.f32.mrf.mxu0 }
 0x287   :  { %v1586_v22 = vmax.f32 %v1554_v30, 0.0 }
 0x288   :  { %v1478_v50 = vpop.f32.mrf.mxu3 }
 0x289   :  { %v1604_v6 = vpack.c.bf16 %v1586_v22, %v1584_v29  ;;  %v1479_v15 = vadd.f32 %v1478_v50, %v1430_v13 }
 0x28b   :  { %1822 = vmatmul.bf16.gmra.mxu1 %v1604_v6  ;;  %v1518_v42 = vmul.f32 %v3467_v16, %v1479_v15 }
 0x28d   :  { %v1556_v20 = vadd.f32 %v3474_v61, %v1518_v42  ;;  %v1759_v39 = vpop.f32.mrf.mxu0 }
 0x28f   :  { %v1588_v0 = vmax.f32 %v1556_v20, 0.0 }
 0x290   :  { %v1480_v38 = vpop.f32.mrf.mxu3 }
 0x291   :  { %v1481_v35 = vadd.f32 %v1480_v38, %v1432_v40 }
 0x293   :  { %v1520_v23 = vmul.f32 %v3467_v16, %v1481_v35  ;;  %v3546_v16 = vld [vmem:[%s3597_s9] ss:$0 sm:$0xff] }
 0x295   :  { %v1558_v44 = vadd.f32 %v3474_v61, %v1520_v23  ;;  %v1761_v2 = vpop.f32.mrf.mxu0 }
 0x297   :  { %v1590_v12 = vmax.f32 %v1558_v44, 0.0 }
 0x299   :  { %v1606_v25 = vpack.c.bf16 %v1590_v12, %v1588_v0 }
 0x29b   :  { %1827 = vmatmul.bf16.gmra.mxu1 %v1606_v25 }
 0x29d   :  { %v1764_v29 = vpop.f32.mrf.mxu0 }
 0x2a5   :  { %v1766_v15 = vpop.f32.mrf.mxu0 }
 0x2a8   :  { %v1793_v55 = vpop.f32.mrf.mxu1 }
 0x2a9   :  { %v1794_v46 = vadd.f32 %v1793_v55, %v1744_v3 }
 0x2ab   :  { %v1837_v45 = vmul.f32 %v3540_v21, %v1794_v46 }
 0x2ad   :  { %v1857_v62 = vadd.f32 %v3546_v16, %v1837_v45  ;;  %v1769_v35 = vpop.f32.mrf.mxu0 }
 0x2af   :  { %v1873_v43 = vmax.f32 %v1857_v62, 0.0 }
 0x2b0   :  { %v1795_v61 = vpop.f32.mrf.mxu1 }
 0x2b1   :  { %v1796_v32 = vadd.f32 %v1795_v61, %v1746_v54 }
 0x2b3   :  { %v1838_v33 = vmul.f32 %v3540_v21, %v1796_v32 }
 0x2b5   :  { %v1858_v11 = vadd.f32 %v3546_v16, %v1838_v33 }
 0x2b7   :  { %v1874_v4 = vmax.f32 %v1858_v11, 0.0 }
 0x2b8   :  { %v1798_v36 = vpop.f32.mrf.mxu1 }
 0x2b9   :  { %v1889_v41 = vpack.c.bf16 %v1874_v4, %v1873_v43  ;;  %v1799_v18 = vadd.f32 %v1798_v36, %v1749_v1 }
 0x2bb   :  { %1973 = vmatmul.bf16.vlgmr.msrb.gmra.mxu2 %v1889_v41  ;;  %v1839_v60 = vmul.f32 %v3540_v21, %v1799_v18 }
 0x2bd   :  { %v1859_v5 = vadd.f32 %v3546_v16, %v1839_v60 }
 0x2bf   :  { %v1875_v26 = vmax.f32 %v1859_v5, 0.0 }
 0x2c0   :  { %v1800_v47 = vpop.f32.mrf.mxu1 }
 0x2c1   :  { %v1801_v57 = vadd.f32 %v1800_v47, %v1751_v14  ;;  %v1771_v14 = vpop.f32.mrf.mxu0 }
 0x2c3   :  { %v1840_v51 = vmul.f32 %v3540_v21, %v1801_v57 }
 0x2c5   :  { %v1860_v53 = vadd.f32 %v3546_v16, %v1840_v51 }
 0x2c7   :  { %v1876_v52 = vmax.f32 %v1860_v53, 0.0 }
 0x2c8   :  { %v1803_v7 = vpop.f32.mrf.mxu1 }
 0x2c9   :  { %v1890_v37 = vpack.c.bf16 %v1876_v52, %v1875_v26  ;;  %v1804_v9 = vadd.f32 %v1803_v7, %v1754_v56  ;;  %v1774_v62 = vpop.f32.mrf.mxu0 }
 0x2cb   :  { %1978 = vmatmul.bf16.gmra.mxu2 %v1890_v37  ;;  %v1841_v34 = vmul.f32 %v3540_v21, %v1804_v9 }
 0x2cd   :  { %v1861_v63 = vadd.f32 %v3546_v16, %v1841_v34 }
 0x2cf   :  { %v1877_v17 = vmax.f32 %v1861_v63, 0.0 }
 0x2d0   :  { %v1805_v10 = vpop.f32.mrf.mxu1 }
 0x2d1   :  { %v1806_v31 = vadd.f32 %v1805_v10, %v1756_v8  ;;  %v1776_v60 = vpop.f32.mrf.mxu0 }
 0x2d3   :  { %v1842_v27 = vmul.f32 %v3540_v21, %v1806_v31 }
 0x2d5   :  { %v1862_v48 = vadd.f32 %v3546_v16, %v1842_v27 }
 0x2d7   :  { %v1878_v49 = vmax.f32 %v1862_v48, 0.0 }
 0x2d8   :  { %v1808_v30 = vpop.f32.mrf.mxu1 }
 0x2d9   :  { %v1891_v19 = vpack.c.bf16 %v1878_v49, %v1877_v17  ;;  %v1809_v22 = vadd.f32 %v1808_v30, %v1759_v39  ;;  %v1779_v26 = vpop.f32.mrf.mxu0 }
 0x2db   :  { %1983 = vmatmul.bf16.gmra.mxu2 %v1891_v19  ;;  %v1843_v50 = vmul.f32 %v3540_v21, %v1809_v22 }
 0x2dd   :  { %v1863_v3 = vadd.f32 %v3546_v16, %v1843_v50 }
 0x2df   :  { %v1879_v28 = vmax.f32 %v1863_v3, 0.0 }
 0x2e0   :  { %v1810_v13 = vpop.f32.mrf.mxu1 }
 0x2e1   :  { %v1811_v6 = vadd.f32 %v1810_v13, %v1761_v2  ;;  %v1781_v10 = vpop.f32.mrf.mxu0 }
 0x2e3   :  { %v1844_v24 = vmul.f32 %v3540_v21, %v1811_v6 }
 0x2e5   :  { %v1864_v58 = vadd.f32 %v3546_v16, %v1844_v24 }
 0x2e7   :  { %v1880_v40 = vmax.f32 %v1864_v58, 0.0 }
 0x2e8   :  { %v1813_v42 = vpop.f32.mrf.mxu1 }
 0x2e9   :  { %v1892_v59 = vpack.c.bf16 %v1880_v40, %v1879_v28  ;;  %v1814_v38 = vadd.f32 %v1813_v42, %v1764_v29  ;;  %v2666_v29 = vld [vmem:[%s3599_s11] ss:$0 sm:$0xff]  ;;  %s2778_s11 = smov [#allocation8]  }
 0x2ea   :  { %s2034_s21 = sshll.u32 %s2778_s11, 4  ;;  %s2035_s21 = int_to_ptr.vmem [resolvable:$true] %s2034_s21 }
 0x2eb   :  { %1988 = vmatmul.bf16.gmra.mxu2 %v1892_v59  ;;  %v1845_v20 = vmul.f32 %v3540_v21, %v1814_v38 }
 0x2ed   :  { %v1865_v44 = vadd.f32 %v3546_v16, %v1845_v20 }
 0x2ef   :  { %v1881_v25 = vmax.f32 %v1865_v44, 0.0 }
 0x2f0   :  { %v1815_v23 = vpop.f32.mrf.mxu1 }
 0x2f1   :  { %v1816_v54 = vadd.f32 %v1815_v23, %v1766_v15 }
 0x2f3   :  { %v1846_v0 = vmul.f32 %v3540_v21, %v1816_v54 }
 0x2f5   :  { %v1866_v12 = vadd.f32 %v3546_v16, %v1846_v0 }
 0x2f7   :  { %v1882_v1 = vmax.f32 %v1866_v12, 0.0 }
 0x2f8   :  { %v1818_v55 = vpop.f32.mrf.mxu1 }
 0x2f9   :  { %v1893_v46 = vpack.c.bf16 %v1882_v1, %v1881_v25  ;;  %v1819_v45 = vadd.f32 %v1818_v55, %v1769_v35 }
 0x2fb   :  { %1993 = vmatmul.bf16.gmra.mxu2 %v1893_v46  ;;  %v1847_v61 = vmul.f32 %v3540_v21, %v1819_v45 }
 0x2fd   :  { %v1867_v33 = vadd.f32 %v3546_v16, %v1847_v61 }
 0x2ff   :  { %v1883_v4 = vmax.f32 %v1867_v33, 0.0 }
 0x300   :  { %v1820_v32 = vpop.f32.mrf.mxu1 }
 0x301   :  { %v1821_v56 = vadd.f32 %v1820_v32, %v1771_v14 }
 0x303   :  { %v1848_v11 = vmul.f32 %v3540_v21, %v1821_v56 }
 0x305   :  { %v1868_v43 = vadd.f32 %v3546_v16, %v1848_v11 }
 0x307   :  { %v1884_v36 = vmax.f32 %v1868_v43, 0.0 }
 0x308   :  { %v1823_v41 = vpop.f32.mrf.mxu1 }
 0x309   :  { %v1894_v18 = vpack.c.bf16 %v1884_v36, %v1883_v4  ;;  %v1824_v8 = vadd.f32 %v1823_v41, %v1774_v62 }
 0x30b   :  { %1998 = vmatmul.bf16.gmra.mxu2 %v1894_v18  ;;  %v1849_v47 = vmul.f32 %v3540_v21, %v1824_v8 }
 0x30d   :  { %v1869_v51 = vadd.f32 %v3546_v16, %v1849_v47 }
 0x30f   :  { %v1885_v52 = vmax.f32 %v1869_v51, 0.0 }
 0x310   :  { %v1825_v57 = vpop.f32.mrf.mxu1 }
 0x311   :  { %v1826_v5 = vadd.f32 %v1825_v57, %v1776_v60 }
 0x313   :  { %v1850_v53 = vmul.f32 %v3540_v21, %v1826_v5 }
 0x315   :  { %v1870_v39 = vadd.f32 %v3546_v16, %v1850_v53 }
 0x317   :  { %v1886_v7 = vmax.f32 %v1870_v39, 0.0 }
 0x318   :  { %v1828_v37 = vpop.f32.mrf.mxu1 }
 0x319   :  { %v1895_v9 = vpack.c.bf16 %v1886_v7, %v1885_v52  ;;  %v1829_v34 = vadd.f32 %v1828_v37, %v1779_v26 }
 0x31b   :  { %2003 = vmatmul.bf16.gmra.mxu2 %v1895_v9  ;;  %v1851_v2 = vmul.f32 %v3540_v21, %v1829_v34 }
 0x31d   :  { %v1871_v27 = vadd.f32 %v3546_v16, %v1851_v2 }
 0x31f   :  { %v1887_v49 = vmax.f32 %v1871_v27, 0.0 }
 0x320   :  { %v1830_v31 = vpop.f32.mrf.mxu1 }
 0x321   :  { %v1831_v63 = vadd.f32 %v1830_v31, %v1781_v10 }
 0x323   :  { %v1852_v48 = vmul.f32 %v3540_v21, %v1831_v63 }
 0x325   :  { %v1872_v17 = vadd.f32 %v3546_v16, %v1852_v48 }
 0x327   :  { %v1888_v30 = vmax.f32 %v1872_v17, 0.0 }
 0x329   :  { %v1896_v19 = vpack.c.bf16 %v1888_v30, %v1887_v49 }
 0x32b   :  { %2008 = vmatmul.bf16.gmra.mxu2 %v1896_v19 }
 0x33e   :  { %v1974_v22 = vpop.f32.mrf.mxu2 }
 0x33f   :  { %v1975_v50 = vadd.f32 %v2666_v29, %v1974_v22 }
 0x341   :  { %2014 = vst [vmem:[#allocation8] sm:$0xff] %v1975_v50 }
 0x346   :  { %v1976_v13 = vpop.f32.mrf.mxu2 }
 0x347   :  { %v1977_v6 = vadd.f32 %v2666_v29, %v1976_v13 }
 0x349   :  { %2015 = vst [vmem:[#allocation8 + $0x8] sm:$0xff] %v1977_v6 }
 0x34e   :  { %v1979_v3 = vpop.f32.mrf.mxu2 }
 0x34f   :  { %v1980_v24 = vadd.f32 %v2666_v29, %v1979_v3 }
 0x351   :  { %2016 = vst [vmem:[#allocation8 + $0x10] sm:$0xff] %v1980_v24 }
 0x356   :  { %v1981_v21 = vpop.f32.mrf.mxu2 }
 0x357   :  { %v1982_v15 = vadd.f32 %v2666_v29, %v1981_v21 }
 0x359   :  { %2017 = vst [vmem:[#allocation8 + $0x18] sm:$0xff] %v1982_v15 }
 0x35e   :  { %v1984_v16 = vpop.f32.mrf.mxu2 }
 0x35f   :  { %v1985_v58 = vadd.f32 %v2666_v29, %v1984_v16 }
 0x361   :  { %2018 = vst [vmem:[#allocation8 + $0x20] sm:$0xff] %v1985_v58 }
 0x366   :  { %v1986_v28 = vpop.f32.mrf.mxu2 }
 0x367   :  { %v1987_v40 = vadd.f32 %v2666_v29, %v1986_v28 }
 0x369   :  { %2019 = vst [vmem:[#allocation8 + $0x28] sm:$0xff] %v1987_v40 }
 0x36e   :  { %v1989_v42 = vpop.f32.mrf.mxu2 }
 0x36f   :  { %v1990_v59 = vadd.f32 %v2666_v29, %v1989_v42 }
 0x371   :  { %2020 = vst [vmem:[#allocation8 + $0x30] sm:$0xff] %v1990_v59 }
 0x376   :  { %v1991_v38 = vpop.f32.mrf.mxu2 }
 0x377   :  { %v1992_v35 = vadd.f32 %v2666_v29, %v1991_v38 }
 0x379   :  { %2021 = vst [vmem:[#allocation8 + $0x38] sm:$0xff] %v1992_v35 }
 0x37e   :  { %v1994_v20 = vpop.f32.mrf.mxu2 }
 0x37f   :  { %v1995_v23 = vadd.f32 %v2666_v29, %v1994_v20 }
 0x381   :  { %2022 = vst [vmem:[#allocation8 + $0x40] sm:$0xff] %v1995_v23 }
 0x386   :  { %v1996_v54 = vpop.f32.mrf.mxu2 }
 0x387   :  { %v1997_v44 = vadd.f32 %v2666_v29, %v1996_v54 }
 0x389   :  { %2023 = vst [vmem:[#allocation8 + $0x48] sm:$0xff] %v1997_v44 }
 0x38e   :  { %v1999_v0 = vpop.f32.mrf.mxu2 }
 0x38f   :  { %v2000_v12 = vadd.f32 %v2666_v29, %v1999_v0 }
 0x391   :  { %2024 = vst [vmem:[#allocation8 + $0x50] sm:$0xff] %v2000_v12 }
 0x396   :  { %v2001_v25 = vpop.f32.mrf.mxu2 }
 0x397   :  { %v2002_v1 = vadd.f32 %v2666_v29, %v2001_v25 }
 0x399   :  { %2025 = vst [vmem:[#allocation8 + $0x58] sm:$0xff] %v2002_v1 }
 0x39e   :  { %v2004_v14 = vpop.f32.mrf.mxu2 }
 0x39f   :  { %v2005_v55 = vadd.f32 %v2666_v29, %v2004_v14 }
 0x3a1   :  { %2026 = vst [vmem:[#allocation8 + $0x60] sm:$0xff] %v2005_v55 }
 0x3a6   :  { %v2006_v46 = vpop.f32.mrf.mxu2 }
 0x3a7   :  { %v2007_v45 = vadd.f32 %v2666_v29, %v2006_v46 }
 0x3a9   :  { %2027 = vst [vmem:[#allocation8 + $0x68] sm:$0xff] %v2007_v45 }
 0x3ae   :  { %v2009_v61 = vpop.f32.mrf.mxu2 }
 0x3af   :  { %v2010_v32 = vadd.f32 %v2666_v29, %v2009_v61 }
 0x3b1   :  { %2028 = vst [vmem:[#allocation8 + $0x70] sm:$0xff] %v2010_v32 }
 0x3b6   :  { %v2011_v56 = vpop.f32.mrf.mxu2 }
 0x3b7   :  { %v2012_v62 = vadd.f32 %v2666_v29, %v2011_v56 }
 0x3b9   :  { %2029 = vst [vmem:[#allocation8 + $0x78] sm:$0xff] %v2012_v62 }
 0x3ba   :  { %2042 = dma.vmem_to_hbm [thread:$0]  %s2035_s21, 2048, %s2037_s7, [#allocation4], %s2770_s29, %s2770_s29, %s2771_s30  }
 0x3bb   :  { %2767 = dma.done.wait [#allocation4], 2048  }
 0x3bc   :  { %2768 = vsyncadd [#allocation4], 4294965248 }
 0x3bd   :  { %2047 = vsyncpa [#allocation3], 1 }
 0x3be   :  { %2048 = vsyncpa [#allocation6], 1 }
 0x3bf   :  { %2049 = vsyncpa [#allocation4], 1 }

</bundles_post_ra>
